<compile_context>
chip_gen: v7x
topology: tpu7x:2x2x1
jax: 0.10.0
libtpu: 0.0.40
codegen_flags: <defaults>
</compile_context>

<pallas_src>
import jax
import jax.numpy as jnp
from jax.experimental import pallas as pl
from jax.experimental.pallas import tpu as pltpu


IN_FEATURES = 28 * 28    # 784
K_PAD = 896              # 784 padded up to a multiple of 128
HIDDEN = 512
OUT_FEATURES = 10
OUT_PAD = 128            # 10 padded up to a full lane tile
BN_EPS = 1e-5
DEFAULT_TILE_B = 512     # batch tile (rows per MXU pass); still tiny vs. VMEM


def _round_up(n, m):
    return ((n + m - 1) // m) * m


def _mlp_kernel(x_ref, w1_ref, s1_ref, b1_ref,
                w2_ref, s2_ref, b2_ref, w3_ref, o_ref):
    """Fused 3-layer binarized MLP forward (one batch tile per grid step).

    x_ref : (TILE_B, 896)  bf16   (zero-padded 784 -> 896)
    w1_ref: (896, 512)     bf16   (binarized +-1, zero rows beyond 784)
    s1_ref, b1_ref: (1, 512) f32  folded BatchNorm1d scale / bias
    w2_ref: (512, 512)     bf16   (binarized +-1)
    s2_ref, b2_ref: (1, 512) f32
    w3_ref: (512, 128)     bf16   (binarized +-1, zero cols beyond 10)
    o_ref : (TILE_B, 128)  f32
    """
    x = x_ref[...]

    # fc1 -> sigmoid -> batchnorm1 (folded).  bf16 matmul inputs, f32 accumulate.
    h1 = jnp.dot(x, w1_ref[...], preferred_element_type=jnp.float32)
    h1 = jax.nn.sigmoid(h1)
    h1 = h1 * s1_ref[...] + b1_ref[...]
    h1 = h1.astype(jnp.bfloat16)

    # fc2 -> sigmoid -> batchnorm2 (folded)
    h2 = jnp.dot(h1, w2_ref[...], preferred_element_type=jnp.float32)
    h2 = jax.nn.sigmoid(h2)
    h2 = h2 * s2_ref[...] + b2_ref[...]
    h2 = h2.astype(jnp.bfloat16)

    # dropout: eval mode -> identity (no-op)

    # fc3 (output padded to 128 lanes; wrapper slices back to 10)
    o_ref[...] = jnp.dot(h2, w3_ref[...], preferred_element_type=jnp.float32)


def binarized_mlp_forward(x_nchw, params, tile_b=DEFAULT_TILE_B):
    """x_nchw: (B, 1, 28, 28) float32.  Returns (B, 10) float32 logits."""
    B = x_nchw.shape[0]
    (w1b, s1, b1, w2b, s2, b2, w3b) = params

    # Flatten and zero-pad the feature dim 784 -> 896 (multiple of 128).
    x = x_nchw.reshape(B, IN_FEATURES).astype(jnp.float32)
    x = jnp.pad(x, ((0, 0), (0, K_PAD - IN_FEATURES)))

    # Pick a batch tile: small batches get one full (8-aligned) tile, large
    # batches get DEFAULT_TILE_B rows per grid step.  Pad B so the grid divides.
    tb = min(tile_b, _round_up(B, 8))
    b_pad = _round_up(B, tb)
    if b_pad != B:
        x = jnp.pad(x, ((0, b_pad - B), (0, 0)))
    x = x.astype(jnp.bfloat16)

    num_tiles = pl.cdiv(b_pad, tb)

    # x / out tile along the batch axis; weights & BN vectors stay resident
    # (constant index_map -> fetched once, reused across all grid steps).
    x_spec = pl.BlockSpec((tb, K_PAD), lambda i: (i, 0))
    o_spec = pl.BlockSpec((tb, OUT_PAD), lambda i: (i, 0))
    w1_spec = pl.BlockSpec((K_PAD, HIDDEN), lambda i: (0, 0))
    w2_spec = pl.BlockSpec((HIDDEN, HIDDEN), lambda i: (0, 0))
    w3_spec = pl.BlockSpec((HIDDEN, OUT_PAD), lambda i: (0, 0))
    bn_spec = pl.BlockSpec((1, HIDDEN), lambda i: (0, 0))

    flops = 2 * b_pad * (K_PAD * HIDDEN + HIDDEN * HIDDEN + HIDDEN * OUT_PAD)
    transcendentals = 2 * b_pad * HIDDEN  # two sigmoid layers
    bytes_accessed = (
        x.size * 2                                      # bf16 input
        + (w1b.size + w2b.size + w3b.size) * 2          # bf16 weights
        + (s1.size + b1.size + s2.size + b2.size) * 4   # f32 BN params
        + b_pad * OUT_PAD * 4                           # f32 output
    )

    out = pl.pallas_call(
        _mlp_kernel,
        out_shape=jax.ShapeDtypeStruct((b_pad, OUT_PAD), jnp.float32),
        grid=(num_tiles,),
        in_specs=[x_spec, w1_spec, bn_spec, bn_spec,
                  w2_spec, bn_spec, bn_spec, w3_spec],
        out_specs=o_spec,
        compiler_params=pltpu.CompilerParams(
            dimension_semantics=("parallel",),
            vmem_limit_bytes=48 * 1024 * 1024),
        cost_estimate=pl.CostEstimate(
            flops=flops,
            transcendentals=transcendentals,
            bytes_accessed=bytes_accessed),
    )(x, w1b, s1, b1, w2b, s2, b2, w3b)

    return out[:B, :OUT_FEATURES]


def _stochastic_binarize(key, w):
    """BinaryConnect 'Stochastic' binarization: P(w_b=+1) = clip((w+1)/2, 0, 1)."""
    p = jnp.clip((w + 1.0) * 0.5, 0.0, 1.0)
    u = jax.random.uniform(key, w.shape, dtype=w.dtype)
    return jnp.where(u < p, 1.0, -1.0).astype(jnp.float32)


def _fold_bn(gamma, beta, running_mean, running_var, eps=BN_EPS):
    scale = gamma / jnp.sqrt(running_var + eps)
    bias = beta - running_mean * scale
    return scale.reshape(1, -1), bias.reshape(1, -1)


def make_params(key):
    ks = jax.random.split(key, 8)

    # Real-valued weights, PyTorch Linear layout (out, in), then transpose -> (in, out).
    w1 = jax.random.uniform(ks[0], (HIDDEN, IN_FEATURES), jnp.float32, -0.1, 0.1)
    w2 = jax.random.uniform(ks[1], (HIDDEN, HIDDEN), jnp.float32, -0.1, 0.1)
    w3 = jax.random.uniform(ks[2], (OUT_FEATURES, HIDDEN), jnp.float32, -0.1, 0.1)

    w1b = _stochastic_binarize(ks[3], w1).T  # (784, 512)
    w2b = _stochastic_binarize(ks[4], w2).T  # (512, 512)
    w3b = _stochastic_binarize(ks[5], w3).T  # (512, 10)

    # Pad to MXU/lane-friendly shapes (zero padding is a mathematical no-op),
    # and cast to bf16: +-1 (and 0) are exactly representable in bf16.
    w1b = jnp.pad(w1b, ((0, K_PAD - IN_FEATURES), (0, 0))).astype(jnp.bfloat16)     # (896, 512)
    w2b = w2b.astype(jnp.bfloat16)                                                   # (512, 512)
    w3b = jnp.pad(w3b, ((0, 0), (0, OUT_PAD - OUT_FEATURES))).astype(jnp.bfloat16)   # (512, 128)

    # BatchNorm1d parameters (deterministic, non-trivial), eval-mode running stats.
    gamma1 = 1.0 + 0.01 * jnp.arange(HIDDEN, dtype=jnp.float32)
    beta1 = 0.1 * jnp.ones((HIDDEN,), jnp.float32)
    rmean1 = 0.05 * jnp.ones((HIDDEN,), jnp.float32)
    rvar1 = jnp.ones((HIDDEN,), jnp.float32)

    gamma2 = 1.0 - 0.005 * jnp.arange(HIDDEN, dtype=jnp.float32) / HIDDEN
    beta2 = -0.05 * jnp.ones((HIDDEN,), jnp.float32)
    rmean2 = 0.1 * jnp.ones((HIDDEN,), jnp.float32)
    rvar2 = 1.5 * jnp.ones((HIDDEN,), jnp.float32)

    s1, b1 = _fold_bn(gamma1, beta1, rmean1, rvar1)
    s2, b2 = _fold_bn(gamma2, beta2, rmean2, rvar2)

    return (w1b, s1, b1, w2b, s2, b2, w3b)


def _reference_forward(x_nchw, params):
    """Pure-JAX reference (same bf16 matmul inputs, f32 accumulation)."""
    (w1b, s1, b1, w2b, s2, b2, w3b) = params
    B = x_nchw.shape[0]
    x = x_nchw.reshape(B, IN_FEATURES).astype(jnp.float32)
    x = jnp.pad(x, ((0, 0), (0, K_PAD - IN_FEATURES))).astype(jnp.bfloat16)
    h1 = jnp.dot(x, w1b, preferred_element_type=jnp.float32)
    h1 = jax.nn.sigmoid(h1) * s1 + b1
    h2 = jnp.dot(h1.astype(jnp.bfloat16), w2b, preferred_element_type=jnp.float32)
    h2 = jax.nn.sigmoid(h2) * s2 + b2
    o = jnp.dot(h2.astype(jnp.bfloat16), w3b, preferred_element_type=jnp.float32)
    return o[:, :OUT_FEATURES]


if __name__ == "__main__":
    key = jax.random.PRNGKey(0)
    k_x, k_p = jax.random.split(key)

    B = 8
    x = jax.random.normal(k_x, (B, 1, 28, 28), dtype=jnp.float32)  # NCHW, MNIST-like
    params = make_params(k_p)

    out = binarized_mlp_forward(x, params)
    out = jax.block_until_ready(out)

    assert out.shape == (B, OUT_FEATURES), out.shape
    assert out.dtype == jnp.float32
    assert bool(jnp.all(jnp.isfinite(out)))

    ref = _reference_forward(x, params)
    assert bool(jnp.allclose(out, ref, atol=1e-2, rtol=1e-2))

    print("KERNEL_OK")
</pallas_src>

<mosaic_0001>
module attributes {stable_mosaic.version = 11 : i64} {
  func.func @_mlp_kernel(%arg0: i32, %arg1: memref<8x896xbf16, #tpu.memory_space<vmem>>, %arg2: memref<896x512xbf16, #tpu.memory_space<vmem>>, %arg3: memref<1x512xf32, #tpu.memory_space<vmem>>, %arg4: memref<1x512xf32, #tpu.memory_space<vmem>>, %arg5: memref<512x512xbf16, #tpu.memory_space<vmem>>, %arg6: memref<1x512xf32, #tpu.memory_space<vmem>>, %arg7: memref<1x512xf32, #tpu.memory_space<vmem>>, %arg8: memref<512x128xbf16, #tpu.memory_space<vmem>>, %arg9: memref<8x128xf32, #tpu.memory_space<vmem>>) attributes {dimension_semantics = [#tpu.dimension_semantics<parallel>], iteration_bounds = array<i64: 1>, scalar_prefetch = 0 : i64, scratch_operands = 0 : i64, tpu.core_type = #tpu.core_type<tc>, window_params = [{transform_indices = @transform_0, window_bounds = array<i64: 8, 896>}, {pipeline_mode = #tpu.pipeline_mode<synchronous>, transform_indices = @transform_1, window_bounds = array<i64: 896, 512>}, {pipeline_mode = #tpu.pipeline_mode<synchronous>, transform_indices = @transform_2, window_bounds = array<i64: 1, 512>}, {pipeline_mode = #tpu.pipeline_mode<synchronous>, transform_indices = @transform_3, window_bounds = array<i64: 1, 512>}, {pipeline_mode = #tpu.pipeline_mode<synchronous>, transform_indices = @transform_4, window_bounds = array<i64: 512, 512>}, {pipeline_mode = #tpu.pipeline_mode<synchronous>, transform_indices = @transform_5, window_bounds = array<i64: 1, 512>}, {pipeline_mode = #tpu.pipeline_mode<synchronous>, transform_indices = @transform_6, window_bounds = array<i64: 1, 512>}, {pipeline_mode = #tpu.pipeline_mode<synchronous>, transform_indices = @transform_7, window_bounds = array<i64: 512, 128>}, {transform_indices = @transform_8, window_bounds = array<i64: 8, 128>}]} {
    %c0 = arith.constant 0 : index
    %c0_0 = arith.constant 0 : index
    %0 = vector.load %arg1[%c0, %c0_0] : memref<8x896xbf16, #tpu.memory_space<vmem>>, vector<8x896xbf16>
    %c0_1 = arith.constant 0 : index
    %c0_2 = arith.constant 0 : index
    %1 = vector.load %arg2[%c0_1, %c0_2] : memref<896x512xbf16, #tpu.memory_space<vmem>>, vector<896x512xbf16>
    %cst = arith.constant dense<0.000000e+00> : vector<8x512xf32>
    %2 = tpu.matmul %0, %1, %cst {dimension_numbers = #tpu.dot_dimension_numbers<[1], [0], [0], [1], [0, 0, 1, 1], [], []>} : vector<8x896xbf16>, vector<896x512xbf16>, vector<8x512xf32> -> vector<8x512xf32>
    %3 = arith.negf %2 : vector<8x512xf32>
    %4 = math.exp %3 : vector<8x512xf32>
    %cst_3 = arith.constant 1.000000e+00 : f32
    %5 = vector.broadcast %cst_3 : f32 to vector<8x512xf32>
    %6 = arith.addf %5, %4 : vector<8x512xf32>
    %7 = arith.divf %5, %6 : vector<8x512xf32>
    %c0_4 = arith.constant 0 : index
    %c0_5 = arith.constant 0 : index
    %8 = vector.load %arg3[%c0_4, %c0_5] : memref<1x512xf32, #tpu.memory_space<vmem>>, vector<1x512xf32>
    %9 = vector.broadcast %8 : vector<1x512xf32> to vector<8x512xf32>
    %10 = arith.mulf %7, %9 : vector<8x512xf32>
    %c0_6 = arith.constant 0 : index
    %c0_7 = arith.constant 0 : index
    %11 = vector.load %arg4[%c0_6, %c0_7] : memref<1x512xf32, #tpu.memory_space<vmem>>, vector<1x512xf32>
    %12 = vector.broadcast %11 : vector<1x512xf32> to vector<8x512xf32>
    %13 = arith.addf %10, %12 : vector<8x512xf32>
    %14 = arith.truncf %13 : vector<8x512xf32> to vector<8x512xbf16>
    %c0_8 = arith.constant 0 : index
    %c0_9 = arith.constant 0 : index
    %15 = vector.load %arg5[%c0_8, %c0_9] : memref<512x512xbf16, #tpu.memory_space<vmem>>, vector<512x512xbf16>
    %cst_10 = arith.constant dense<0.000000e+00> : vector<8x512xf32>
    %16 = tpu.matmul %14, %15, %cst_10 {dimension_numbers = #tpu.dot_dimension_numbers<[1], [0], [0], [1], [0, 0, 1, 1], [], []>} : vector<8x512xbf16>, vector<512x512xbf16>, vector<8x512xf32> -> vector<8x512xf32>
    %17 = arith.negf %16 : vector<8x512xf32>
    %18 = math.exp %17 : vector<8x512xf32>
    %cst_11 = arith.constant 1.000000e+00 : f32
    %19 = vector.broadcast %cst_11 : f32 to vector<8x512xf32>
    %20 = arith.addf %19, %18 : vector<8x512xf32>
    %21 = arith.divf %19, %20 : vector<8x512xf32>
    %c0_12 = arith.constant 0 : index
    %c0_13 = arith.constant 0 : index
    %22 = vector.load %arg6[%c0_12, %c0_13] : memref<1x512xf32, #tpu.memory_space<vmem>>, vector<1x512xf32>
    %23 = vector.broadcast %22 : vector<1x512xf32> to vector<8x512xf32>
    %24 = arith.mulf %21, %23 : vector<8x512xf32>
    %c0_14 = arith.constant 0 : index
    %c0_15 = arith.constant 0 : index
    %25 = vector.load %arg7[%c0_14, %c0_15] : memref<1x512xf32, #tpu.memory_space<vmem>>, vector<1x512xf32>
    %26 = vector.broadcast %25 : vector<1x512xf32> to vector<8x512xf32>
    %27 = arith.addf %24, %26 : vector<8x512xf32>
    %28 = arith.truncf %27 : vector<8x512xf32> to vector<8x512xbf16>
    %c0_16 = arith.constant 0 : index
    %c0_17 = arith.constant 0 : index
    %29 = vector.load %arg8[%c0_16, %c0_17] : memref<512x128xbf16, #tpu.memory_space<vmem>>, vector<512x128xbf16>
    %cst_18 = arith.constant dense<0.000000e+00> : vector<8x128xf32>
    %30 = tpu.matmul %28, %29, %cst_18 {dimension_numbers = #tpu.dot_dimension_numbers<[1], [0], [0], [1], [0, 0, 1, 1], [], []>} : vector<8x512xbf16>, vector<512x128xbf16>, vector<8x128xf32> -> vector<8x128xf32>
    %c0_19 = arith.constant 0 : index
    %c0_20 = arith.constant 0 : index
    %31 = vector.load %arg9[%c0_19, %c0_20] : memref<8x128xf32, #tpu.memory_space<vmem>>, vector<8x128xf32>
    tpu.vector_store %arg9[%c0_19, %c0_20], %30 {strides = array<i32>} : memref<8x128xf32, #tpu.memory_space<vmem>>, vector<8x128xf32>,
    return
  }
  func.func @transform_0(%arg0: i32) -> (i32, i32) {
    %c0_i32 = arith.constant 0 : i32
    %c0_i32_0 = arith.constant 0 : i32
    return %arg0, %c0_i32 : i32, i32
  }
  func.func @transform_1(%arg0: i32) -> (i32, i32) {
    %c0_i32 = arith.constant 0 : i32
    %c0_i32_0 = arith.constant 0 : i32
    %c0_i32_1 = arith.constant 0 : i32
    return %c0_i32, %c0_i32_0 : i32, i32
  }
  func.func @transform_2(%arg0: i32) -> (i32, i32) {
    %c0_i32 = arith.constant 0 : i32
    %c0_i32_0 = arith.constant 0 : i32
    %c0_i32_1 = arith.constant 0 : i32
    return %c0_i32, %c0_i32_0 : i32, i32
  }
  func.func @transform_3(%arg0: i32) -> (i32, i32) {
    %c0_i32 = arith.constant 0 : i32
    %c0_i32_0 = arith.constant 0 : i32
    %c0_i32_1 = arith.constant 0 : i32
    return %c0_i32, %c0_i32_0 : i32, i32
  }
  func.func @transform_4(%arg0: i32) -> (i32, i32) {
    %c0_i32 = arith.constant 0 : i32
    %c0_i32_0 = arith.constant 0 : i32
    %c0_i32_1 = arith.constant 0 : i32
    return %c0_i32, %c0_i32_0 : i32, i32
  }
  func.func @transform_5(%arg0: i32) -> (i32, i32) {
    %c0_i32 = arith.constant 0 : i32
    %c0_i32_0 = arith.constant 0 : i32
    %c0_i32_1 = arith.constant 0 : i32
    return %c0_i32, %c0_i32_0 : i32, i32
  }
  func.func @transform_6(%arg0: i32) -> (i32, i32) {
    %c0_i32 = arith.constant 0 : i32
    %c0_i32_0 = arith.constant 0 : i32
    %c0_i32_1 = arith.constant 0 : i32
    return %c0_i32, %c0_i32_0 : i32, i32
  }
  func.func @transform_7(%arg0: i32) -> (i32, i32) {
    %c0_i32 = arith.constant 0 : i32
    %c0_i32_0 = arith.constant 0 : i32
    %c0_i32_1 = arith.constant 0 : i32
    return %c0_i32, %c0_i32_0 : i32, i32
  }
  func.func @transform_8(%arg0: i32) -> (i32, i32) {
    %c0_i32 = arith.constant 0 : i32
    %c0_i32_0 = arith.constant 0 : i32
    return %arg0, %c0_i32 : i32, i32
  }
}

</mosaic_0001>

<bundles_post_ra>
// kernel: tpu_custom_call.1
= control target key start
LH: loop header
LB: loop body
LE: loop exit
PB: predicated region body
PF: predicated region fallthrough
CT: control target
= control target key end

     0   :  { %13 = vsyncpa [#allocation3], 0  ;;  %s4606_s0 = inlined_call_operand.hbm [shape: bf16[8,896], index: 0, kind: input, shape index: {}]   ;;  %s4607_s1 = inlined_call_operand.hbm [shape: bf16[896,512], index: 1, kind: input, shape index: {}]   ;;  %s4608_s2 = inlined_call_operand.vmem [shape: f32[1,512], index: 2, kind: input, shape index: {}]   ;;  %s4609_s3 = inlined_call_operand.vmem [shape: f32[1,512], index: 3, kind: input, shape index: {}]   ;;  %s4610_s4 = inlined_call_operand.hbm [shape: bf16[512,512], index: 4, kind: input, shape index: {}]   ;;  %s4611_s5 = inlined_call_operand.vmem [shape: f32[1,512], index: 5, kind: input, shape index: {}]   ;;  %s4612_s6 = inlined_call_operand.vmem [shape: f32[1,512], index: 6, kind: input, shape index: {}]   ;;  %s4613_s7 = inlined_call_operand.hbm [shape: bf16[512,128], index: 7, kind: input, shape index: {}]   ;;  %s4614_s8 = inlined_call_operand.hbm [shape: f32[8,128], index: 8, kind: output, shape index: {}]  }
   0x1   :  { %14 = vsyncpa [#allocation6], 0 }
   0x2   :  { %15 = vsyncpa [#allocation9], 0 }
   0x3   :  { %16 = vsyncpa [#allocation4], 0  ;;  %s4433_s27 = smov [#allocation5]   ;;  %s4315_s9 = scalar_lea.hbm %s4607_s1, 28672 }
   0x4   :  { %s32_s28 = sshll.u32 %s4433_s27, 4  ;;  %p4316_p0 = scmp.ne.s32.totalorder %s4607_s1, %s4315_s9  ;;  %s33_s28 = int_to_ptr.vmem [resolvable:$true] %s32_s28 }
   0x5   :  { %p4319_p1 = scmp.lt.u32.totalorder %s4315_s9, %s4607_s1 }
   0x7   :  { %p4321_p2 = pnand %p4319_p1, %p4316_p0 }
   0x9   :  { %4324 = shalt.err (!%p4321_p2)
}
   0xa   :  { %s4325_s14 = scalar_lea.vmem %s33_s28, 28672  ;;  %p4330_p4 = scmp.lt.s32.totalorder %s33_s28, %s33_s28 }
   0xb   :  { %p4326_p3 = scmp.ne.s32.totalorder %s33_s28, %s4325_s14  ;;  %p4331_p5 = scmp.lt.s32.totalorder %s4325_s14, %s4325_s14 }
   0xd   :  { %p4332_p6 = por %p4331_p5, %p4330_p4 }
   0xf   :  { %p4333_p7 = pnand %p4332_p6, %p4326_p3 }
  0x11   :  { %4336 = shalt.err (!%p4333_p7)
}
  0x12   :  { %s4434_s15 = smov 256   ;;  %s4435_s16 = smov 16  }
  0x13   :  { %38 = dma.hbm_to_vmem [thread:$0]  %s4607_s1, 28672, %s33_s28, [#allocation6], %s4434_s15, %s4434_s15, %s4435_s16  }
  0x14   :  { %s4436_s19 = smov [#allocation2]   ;;  %s4437_s21 = smov [#allocation7]  }
  0x15   :  { %s23_s20 = sshll.u32 %s4436_s19, 4  ;;  %s48_s22 = sshll.u32 %s4437_s21, 4  ;;  %s24_s20 = int_to_ptr.vmem [resolvable:$true] %s23_s20  ;;  %s49_s22 = int_to_ptr.vmem [resolvable:$true] %s48_s22 }
  0x16   :  { %s4337_s25 = scalar_lea.hbm %s4606_s0, 448 }
  0x17   :  { %p4338_p8 = scmp.ne.s32.totalorder %s4606_s0, %s4337_s25  ;;  %p4341_p9 = scmp.lt.u32.totalorder %s4337_s25, %s4606_s0 }
  0x19   :  { %p4343_p10 = pnand %p4341_p9, %p4338_p8 }
  0x1b   :  { %4346 = shalt.err (!%p4343_p10)
}
  0x1c   :  { %s4347_s1 = scalar_lea.vmem %s24_s20, 448  ;;  %p4352_p12 = scmp.lt.s32.totalorder %s24_s20, %s24_s20 }
  0x1d   :  { %p4348_p11 = scmp.ne.s32.totalorder %s24_s20, %s4347_s1  ;;  %p4353_p13 = scmp.lt.s32.totalorder %s4347_s1, %s4347_s1 }
  0x1f   :  { %p4354_p0 = por %p4353_p13, %p4352_p12 }
  0x21   :  { %p4355_p1 = pnand %p4354_p0, %p4348_p11 }
  0x23   :  { %4358 = shalt.err (!%p4355_p1)
}
  0x24   :  { %26 = dma.hbm_to_vmem [thread:$0]  %s4606_s0, 448, %s24_s20, [#allocation3]  }
  0x25   :  { %s4359_s12 = scalar_lea.hbm %s4610_s4, 16384 }
  0x26   :  { %p4360_p2 = scmp.ne.s32.totalorder %s4610_s4, %s4359_s12  ;;  %p4363_p3 = scmp.lt.u32.totalorder %s4359_s12, %s4610_s4 }
  0x28   :  { %p4365_p4 = pnand %p4363_p3, %p4360_p2 }
  0x2a   :  { %4368 = shalt.err (!%p4365_p4)
}
  0x2b   :  { %s4369_s19 = scalar_lea.vmem %s49_s22, 16384  ;;  %p4374_p6 = scmp.lt.s32.totalorder %s49_s22, %s49_s22 }
  0x2c   :  { %p4370_p5 = scmp.ne.s32.totalorder %s49_s22, %s4369_s19  ;;  %p4375_p7 = scmp.lt.s32.totalorder %s4369_s19, %s4369_s19 }
  0x2e   :  { %p4376_p8 = por %p4375_p7, %p4374_p6 }
  0x30   :  { %p4377_p9 = pnand %p4376_p8, %p4370_p5 }
  0x32   :  { %4380 = shalt.err (!%p4377_p9)
}
  0x33   :  { %54 = dma.hbm_to_vmem [thread:$0]  %s4610_s4, 16384, %s49_s22, [#allocation6], %s4434_s15, %s4434_s15, %s4435_s16  }
  0x34   :  { %s4438_s21 = smov [#allocation8]   ;;  %s4381_s26 = scalar_lea.hbm %s4613_s7, 4096 }
  0x35   :  { %s64_s23 = sshll.u32 %s4438_s21, 4  ;;  %p4382_p10 = scmp.ne.s32.totalorder %s4613_s7, %s4381_s26  ;;  %s65_s23 = int_to_ptr.vmem [resolvable:$true] %s64_s23 }
  0x36   :  { %p4385_p11 = scmp.lt.u32.totalorder %s4381_s26, %s4613_s7 }
  0x38   :  { %p4387_p12 = pnand %p4385_p11, %p4382_p10 }
  0x3a   :  { %4390 = shalt.err (!%p4387_p12)
}
  0x3b   :  { %s4391_s28 = scalar_lea.vmem %s65_s23, 4096  ;;  %p4396_p0 = scmp.lt.s32.totalorder %s65_s23, %s65_s23 }
  0x3c   :  { %p4392_p13 = scmp.ne.s32.totalorder %s65_s23, %s4391_s28  ;;  %p4397_p1 = scmp.lt.s32.totalorder %s4391_s28, %s4391_s28 }
  0x3e   :  { %p4398_p2 = por %p4397_p1, %p4396_p0 }
  0x40   :  { %p4399_p3 = pnand %p4398_p2, %p4392_p13 }
  0x42   :  { %4402 = shalt.err (!%p4399_p3)
}
  0x43   :  { %s4439_s4 = smov 64   ;;  %s4440_s15 = smov 4  }
  0x44   :  { %70 = dma.hbm_to_vmem [thread:$0]  %s4613_s7, 4096, %s65_s23, [#allocation9], %s4439_s4, %s4439_s4, %s4440_s15  }
  0x45   :  { %4425 = dma.done.wait [#allocation3], 448  }
  0x46   :  { %4426 = vsyncadd [#allocation3], 4294966848 }
  0x47   :  { %4427 = dma.done.wait [#allocation6], 45056  }
  0x48   :  { %4428 = vsyncadd [#allocation6], 4294922240 }
  0x49   :  { %4429 = dma.done.wait [#allocation9], 4096  }
  0x4a   :  { %4430 = vsyncadd [#allocation9], 4294963200  ;;  %v3716_v0 = vld [vmem:[#allocation5 + $0x4] ss:$16 sps:$4 sm:$0xff]   ;;  %v3718_v1 = vld [vmem:[#allocation5 + $0xc] ss:$16 sps:$4 sm:$0xff]  }
  0x4b   :  { %1457 = vmatprep.subr.bf16.mxu0 %v3716_v0  ;;  %v3720_v2 = vld [vmem:[#allocation5] ss:$16 sps:$4 sm:$0xff]   ;;  %v3721_v3 = vld [vmem:[#allocation5 + $0x8] ss:$16 sps:$4 sm:$0xff]   ;;  %1621 = vmatprep.subr.bf16.mxu1 %v3718_v1  ;;  %v3722_v4 = vld [vmem:[#allocation5 + $0x24] ss:$16 sps:$4 sm:$0xff]  }
  0x4c   :  { %1458 = vmatpush1.bf16.msra.mxu0 %v3720_v2  ;;  %1622 = vmatpush1.bf16.msra.mxu1 %v3721_v3  ;;  %v3724_v5 = vld [vmem:[#allocation5 + $0x2c] ss:$16 sps:$4 sm:$0xff]   ;;  %v3726_v6 = vld [vmem:[#allocation5 + $0x20] ss:$16 sps:$4 sm:$0xff]   ;;  %v3727_v7 = vld [vmem:[#allocation5 + $0x28] ss:$16 sps:$4 sm:$0xff]  }
  0x4d   :  { %1459 = vmatprep.subr.bf16.mxu0 %v3722_v4  ;;  %1623 = vmatprep.subr.bf16.mxu1 %v3724_v5  ;;  %v3728_v8 = vld [vmem:[#allocation5 + $0x44] ss:$16 sps:$4 sm:$0xff]   ;;  %v3730_v9 = vld [vmem:[#allocation5 + $0x4c] ss:$16 sps:$4 sm:$0xff]   ;;  %v3732_v10 = vld [vmem:[#allocation5 + $0x40] ss:$16 sps:$4 sm:$0xff]  }
  0x4e   :  { %v3733_v11 = vld [vmem:[#allocation5 + $0x48] ss:$16 sps:$4 sm:$0xff]   ;;  %v3734_v12 = vld [vmem:[#allocation5 + $0x64] ss:$16 sps:$4 sm:$0xff]   ;;  %v3736_v13 = vld [vmem:[#allocation5 + $0x6c] ss:$16 sps:$4 sm:$0xff]  }
  0x4f   :  { %v3738_v14 = vld [vmem:[#allocation5 + $0x60] ss:$16 sps:$4 sm:$0xff]   ;;  %v3739_v15 = vld [vmem:[#allocation5 + $0x68] ss:$16 sps:$4 sm:$0xff]   ;;  %v3740_v16 = vld [vmem:[#allocation5 + $0x84] ss:$16 sps:$4 sm:$0xff]  }
  0x50   :  { %1460 = vmatpush1.bf16.msra.mxu0 %v3726_v6  ;;  %1624 = vmatpush1.bf16.msra.mxu1 %v3727_v7  ;;  %v3742_v17 = vld [vmem:[#allocation5 + $0x8c] ss:$16 sps:$4 sm:$0xff]   ;;  %v3744_v18 = vld [vmem:[#allocation5 + $0x80] ss:$16 sps:$4 sm:$0xff]   ;;  %v3745_v19 = vld [vmem:[#allocation5 + $0x88] ss:$16 sps:$4 sm:$0xff]  }
  0x51   :  { %1461 = vmatprep.subr.bf16.mxu0 %v3728_v8  ;;  %1625 = vmatprep.subr.bf16.mxu1 %v3730_v9  ;;  %v3746_v20 = vld [vmem:[#allocation5 + $0xa4] ss:$16 sps:$4 sm:$0xff]   ;;  %v3748_v21 = vld [vmem:[#allocation5 + $0xac] ss:$16 sps:$4 sm:$0xff]   ;;  %v3750_v22 = vld [vmem:[#allocation5 + $0xa0] ss:$16 sps:$4 sm:$0xff]  }
  0x52   :  { %v3751_v23 = vld [vmem:[#allocation5 + $0xa8] ss:$16 sps:$4 sm:$0xff]   ;;  %v3752_v24 = vld [vmem:[#allocation5 + $0xc4] ss:$16 sps:$4 sm:$0xff]   ;;  %v3754_v25 = vld [vmem:[#allocation5 + $0xcc] ss:$16 sps:$4 sm:$0xff]  }
  0x53   :  { %v3756_v26 = vld [vmem:[#allocation5 + $0xc0] ss:$16 sps:$4 sm:$0xff]   ;;  %v3757_v27 = vld [vmem:[#allocation5 + $0xc8] ss:$16 sps:$4 sm:$0xff]   ;;  %v3758_v28 = vld [vmem:[#allocation5 + $0xe4] ss:$16 sps:$4 sm:$0xff]  }
  0x54   :  { %1462 = vmatpush1.bf16.msra.mxu0 %v3732_v10  ;;  %1626 = vmatpush1.bf16.msra.mxu1 %v3733_v11  ;;  %v3760_v29 = vld [vmem:[#allocation5 + $0xec] ss:$16 sps:$4 sm:$0xff]   ;;  %v3762_v30 = vld [vmem:[#allocation5 + $0xe0] ss:$16 sps:$4 sm:$0xff]   ;;  %v3763_v31 = vld [vmem:[#allocation5 + $0xe8] ss:$16 sps:$4 sm:$0xff]  }
  0x55   :  { %1463 = vmatprep.subr.bf16.mxu0 %v3734_v12  ;;  %1627 = vmatprep.subr.bf16.mxu1 %v3736_v13  ;;  %v3764_v32 = vld [vmem:[#allocation5 + $0x104] ss:$16 sps:$4 sm:$0xff]   ;;  %v3766_v33 = vld [vmem:[#allocation5 + $0x10c] ss:$16 sps:$4 sm:$0xff]   ;;  %v3768_v34 = vld [vmem:[#allocation5 + $0x100] ss:$16 sps:$4 sm:$0xff]  }
  0x56   :  { %v3769_v35 = vld [vmem:[#allocation5 + $0x108] ss:$16 sps:$4 sm:$0xff]   ;;  %v3770_v36 = vld [vmem:[#allocation5 + $0x124] ss:$16 sps:$4 sm:$0xff]   ;;  %v3772_v37 = vld [vmem:[#allocation5 + $0x12c] ss:$16 sps:$4 sm:$0xff]  }
  0x57   :  { %v3774_v38 = vld [vmem:[#allocation5 + $0x120] ss:$16 sps:$4 sm:$0xff]   ;;  %v3775_v39 = vld [vmem:[#allocation5 + $0x128] ss:$16 sps:$4 sm:$0xff]   ;;  %v3776_v40 = vld [vmem:[#allocation5 + $0x144] ss:$16 sps:$4 sm:$0xff]  }
  0x58   :  { %1464 = vmatpush1.bf16.msra.mxu0 %v3738_v14  ;;  %1628 = vmatpush1.bf16.msra.mxu1 %v3739_v15  ;;  %v3778_v41 = vld [vmem:[#allocation5 + $0x14c] ss:$16 sps:$4 sm:$0xff]   ;;  %v3780_v42 = vld [vmem:[#allocation5 + $0x140] ss:$16 sps:$4 sm:$0xff]   ;;  %v3781_v43 = vld [vmem:[#allocation5 + $0x148] ss:$16 sps:$4 sm:$0xff]  }
  0x59   :  { %1465 = vmatprep.subr.bf16.mxu0 %v3740_v16  ;;  %1629 = vmatprep.subr.bf16.mxu1 %v3742_v17  ;;  %v3782_v44 = vld [vmem:[#allocation5 + $0x164] ss:$16 sps:$4 sm:$0xff]   ;;  %v3784_v45 = vld [vmem:[#allocation5 + $0x16c] ss:$16 sps:$4 sm:$0xff]   ;;  %v3786_v47 = vld [vmem:[#allocation5 + $0x160] ss:$16 sps:$4 sm:$0xff]  }
  0x5a   :  { %v84_v46 = vld [vmem:[#allocation2] sm:$0xff]  ;;  %v3790_v51 = vld [vmem:[#allocation5 + $0x18c] ss:$16 sps:$4 sm:$0xff]   ;;  %v3792_v52 = vld [vmem:[#allocation5 + $0x180] ss:$16 sps:$4 sm:$0xff]  }
  0x5b   :  { %v3232_v48 = vcombine.high %v84_v46, %v84_v46  ;;  %v3787_v49 = vld [vmem:[#allocation5 + $0x168] ss:$16 sps:$4 sm:$0xff]   ;;  %v3788_v50 = vld [vmem:[#allocation5 + $0x184] ss:$16 sps:$4 sm:$0xff]   ;;  %v3796_v55 = vld [vmem:[#allocation5 + $0x1ac] ss:$16 sps:$4 sm:$0xff]   ;;  %v3231_v4 = vcombine.low %v84_v46, %v84_v46 }
  0x5c   :  { %1466 = vmatpush1.bf16.msra.mxu0 %v3744_v18  ;;  %1630 = vmatpush1.bf16.msra.mxu1 %v3745_v19  ;;  %v3793_v53 = vld [vmem:[#allocation5 + $0x188] ss:$16 sps:$4 sm:$0xff]   ;;  %v3794_v54 = vld [vmem:[#allocation5 + $0x1a4] ss:$16 sps:$4 sm:$0xff]   ;;  %v3798_v56 = vld [vmem:[#allocation5 + $0x1a0] ss:$16 sps:$4 sm:$0xff]  }
  0x5d   :  { %1467 = vmatprep.subr.bf16.mxu0 %v3746_v20  ;;  %1631 = vmatprep.subr.bf16.mxu1 %v3748_v21  ;;  %v3799_v57 = vld [vmem:[#allocation5 + $0x1a8] ss:$16 sps:$4 sm:$0xff]   ;;  %v3800_v58 = vld [vmem:[#allocation5 + $0x1c4] ss:$16 sps:$4 sm:$0xff]   ;;  %v3802_v59 = vld [vmem:[#allocation5 + $0x1cc] ss:$16 sps:$4 sm:$0xff]  }
  0x5e   :  { %1489 = vmatprep.mubr.bf16.mxu0 %v3232_v48  ;;  %1653 = vmatprep.mubr.bf16.mxu1 %v3232_v48  ;;  %v3804_v60 = vld [vmem:[#allocation5 + $0x1c0] ss:$16 sps:$4 sm:$0xff]   ;;  %v3805_v61 = vld [vmem:[#allocation5 + $0x1c8] ss:$16 sps:$4 sm:$0xff]   ;;  %v3806_v62 = vld [vmem:[#allocation5 + $0x1e4] ss:$16 sps:$4 sm:$0xff]  }
  0x5f   :  { %v3808_v63 = vld [vmem:[#allocation5 + $0x1ec] ss:$16 sps:$4 sm:$0xff]   ;;  %v3810_v0 = vld [vmem:[#allocation5 + $0x1e0] ss:$16 sps:$4 sm:$0xff]   ;;  %v3811_v1 = vld [vmem:[#allocation5 + $0x1e8] ss:$16 sps:$4 sm:$0xff]  }
  0x60   :  { %1468 = vmatpush1.bf16.msra.mxu0 %v3750_v22  ;;  %1632 = vmatpush1.bf16.msra.mxu1 %v3751_v23  ;;  %v3816_v2 = vld [vmem:[#allocation5 + $0x204] ss:$16 sps:$4 sm:$0xff]   ;;  %v3819_v3 = vld [vmem:[#allocation5 + $0x20c] ss:$16 sps:$4 sm:$0xff]   ;;  %v3814_v5 = vld [vmem:[#allocation5 + $0x200] ss:$16 sps:$4 sm:$0xff]  }
  0x61   :  { %1469 = vmatprep.subr.bf16.mxu0 %v3752_v24  ;;  %1633 = vmatprep.subr.bf16.mxu1 %v3754_v25  ;;  %v3817_v6 = vld [vmem:[#allocation5 + $0x208] ss:$16 sps:$4 sm:$0xff]   ;;  %v3822_v7 = vld [vmem:[#allocation5 + $0x224] ss:$16 sps:$4 sm:$0xff]   ;;  %v3825_v8 = vld [vmem:[#allocation5 + $0x22c] ss:$16 sps:$4 sm:$0xff]  }
  0x62   :  { %v3820_v9 = vld [vmem:[#allocation5 + $0x220] ss:$16 sps:$4 sm:$0xff]   ;;  %v3823_v10 = vld [vmem:[#allocation5 + $0x228] ss:$16 sps:$4 sm:$0xff]   ;;  %v3828_v11 = vld [vmem:[#allocation5 + $0x244] ss:$16 sps:$4 sm:$0xff]  }
  0x63   :  { %v3831_v12 = vld [vmem:[#allocation5 + $0x24c] ss:$16 sps:$4 sm:$0xff]   ;;  %v3826_v13 = vld [vmem:[#allocation5 + $0x240] ss:$16 sps:$4 sm:$0xff]   ;;  %v3829_v14 = vld [vmem:[#allocation5 + $0x248] ss:$16 sps:$4 sm:$0xff]  }
  0x64   :  { %1470 = vmatpush1.bf16.msra.mxu0 %v3756_v26  ;;  %1634 = vmatpush1.bf16.msra.mxu1 %v3757_v27  ;;  %v3834_v15 = vld [vmem:[#allocation5 + $0x264] ss:$16 sps:$4 sm:$0xff]   ;;  %v3837_v16 = vld [vmem:[#allocation5 + $0x26c] ss:$16 sps:$4 sm:$0xff]   ;;  %v3832_v17 = vld [vmem:[#allocation5 + $0x260] ss:$16 sps:$4 sm:$0xff]  }
  0x65   :  { %1471 = vmatprep.subr.bf16.mxu0 %v3758_v28  ;;  %1635 = vmatprep.subr.bf16.mxu1 %v3760_v29  ;;  %v3835_v18 = vld [vmem:[#allocation5 + $0x268] ss:$16 sps:$4 sm:$0xff]   ;;  %v3840_v19 = vld [vmem:[#allocation5 + $0x284] ss:$16 sps:$4 sm:$0xff]   ;;  %v3843_v20 = vld [vmem:[#allocation5 + $0x28c] ss:$16 sps:$4 sm:$0xff]  }
  0x66   :  { %v3838_v21 = vld [vmem:[#allocation5 + $0x280] ss:$16 sps:$4 sm:$0xff]   ;;  %v3841_v22 = vld [vmem:[#allocation5 + $0x288] ss:$16 sps:$4 sm:$0xff]   ;;  %v3846_v23 = vld [vmem:[#allocation5 + $0x2a4] ss:$16 sps:$4 sm:$0xff]  }
  0x67   :  { %v3849_v24 = vld [vmem:[#allocation5 + $0x2ac] ss:$16 sps:$4 sm:$0xff]   ;;  %v3844_v25 = vld [vmem:[#allocation5 + $0x2a0] ss:$16 sps:$4 sm:$0xff]   ;;  %v3847_v26 = vld [vmem:[#allocation5 + $0x2a8] ss:$16 sps:$4 sm:$0xff]  }
  0x68   :  { %1472 = vmatpush1.bf16.msra.mxu0 %v3762_v30  ;;  %1636 = vmatpush1.bf16.msra.mxu1 %v3763_v31  ;;  %v3852_v27 = vld [vmem:[#allocation5 + $0x2c4] ss:$16 sps:$4 sm:$0xff]   ;;  %v3855_v28 = vld [vmem:[#allocation5 + $0x2cc] ss:$16 sps:$4 sm:$0xff]   ;;  %v3850_v31 = vld [vmem:[#allocation5 + $0x2c0] ss:$16 sps:$4 sm:$0xff]  }
  0x69   :  { %1473 = vmatprep.subr.bf16.mxu0 %v3764_v32  ;;  %1637 = vmatprep.subr.bf16.mxu1 %v3766_v33  ;;  %v4542_v29 = vld [vmem:[#allocation2 + $0x8] sm:$0xff]  ;;  %v3853_v32 = vld [vmem:[#allocation5 + $0x2c8] ss:$16 sps:$4 sm:$0xff]   ;;  %v3858_v33 = vld [vmem:[#allocation5 + $0x2e4] ss:$16 sps:$4 sm:$0xff]  }
  0x6a   :  { %v3234_v30 = vcombine.high %v4542_v29, %v4542_v29  ;;  %v3879_v46 = vld [vmem:[#allocation5 + $0x34c] ss:$16 sps:$4 sm:$0xff]   ;;  %v3877_v48 = vld [vmem:[#allocation5 + $0x348] ss:$16 sps:$4 sm:$0xff]  }
  0x6c   :  { %1474 = vmatpush1.bf16.msra.mxu0 %v3768_v34  ;;  %1638 = vmatpush1.bf16.msra.mxu1 %v3769_v35  ;;  %v3861_v34 = vld [vmem:[#allocation5 + $0x2ec] ss:$16 sps:$4 sm:$0xff]   ;;  %v3856_v35 = vld [vmem:[#allocation5 + $0x2e0] ss:$16 sps:$4 sm:$0xff]  }
  0x6d   :  { %1475 = vmatprep.subr.bf16.mxu0 %v3770_v36  ;;  %1639 = vmatprep.subr.bf16.mxu1 %v3772_v37  ;;  %v3859_v36 = vld [vmem:[#allocation5 + $0x2e8] ss:$16 sps:$4 sm:$0xff]   ;;  %v3864_v37 = vld [vmem:[#allocation5 + $0x304] ss:$16 sps:$4 sm:$0xff]  }
  0x70   :  { %1476 = vmatpush1.bf16.msra.mxu0 %v3774_v38  ;;  %1640 = vmatpush1.bf16.msra.mxu1 %v3775_v39  ;;  %v3867_v38 = vld [vmem:[#allocation5 + $0x30c] ss:$16 sps:$4 sm:$0xff]   ;;  %v3862_v39 = vld [vmem:[#allocation5 + $0x300] ss:$16 sps:$4 sm:$0xff]  }
  0x71   :  { %1477 = vmatprep.subr.bf16.mxu0 %v3776_v40  ;;  %1641 = vmatprep.subr.bf16.mxu1 %v3778_v41  ;;  %v3865_v40 = vld [vmem:[#allocation5 + $0x308] ss:$16 sps:$4 sm:$0xff]   ;;  %v3870_v41 = vld [vmem:[#allocation5 + $0x324] ss:$16 sps:$4 sm:$0xff]  }
  0x74   :  { %1478 = vmatpush1.bf16.msra.mxu0 %v3780_v42  ;;  %1642 = vmatpush1.bf16.msra.mxu1 %v3781_v43  ;;  %v3873_v42 = vld [vmem:[#allocation5 + $0x32c] ss:$16 sps:$4 sm:$0xff]   ;;  %v3868_v43 = vld [vmem:[#allocation5 + $0x320] ss:$16 sps:$4 sm:$0xff]  }
  0x75   :  { %1479 = vmatprep.subr.bf16.mxu0 %v3782_v44  ;;  %1643 = vmatprep.subr.bf16.mxu1 %v3784_v45  ;;  %v3871_v44 = vld [vmem:[#allocation5 + $0x328] ss:$16 sps:$4 sm:$0xff]   ;;  %v3876_v45 = vld [vmem:[#allocation5 + $0x344] ss:$16 sps:$4 sm:$0xff]  }
  0x78   :  { %1480 = vmatpush1.bf16.msra.mxu0 %v3786_v47  ;;  %1644 = vmatpush1.bf16.msra.mxu1 %v3787_v49  ;;  %v3874_v47 = vld [vmem:[#allocation5 + $0x340] ss:$16 sps:$4 sm:$0xff]   ;;  %v3882_v49 = vld [vmem:[#allocation5 + $0x364] ss:$16 sps:$4 sm:$0xff]  }
  0x79   :  { %1481 = vmatprep.subr.bf16.mxu0 %v3788_v50  ;;  %1645 = vmatprep.subr.bf16.mxu1 %v3790_v51  ;;  %v3885_v50 = vld [vmem:[#allocation5 + $0x36c] ss:$16 sps:$4 sm:$0xff]   ;;  %v3880_v51 = vld [vmem:[#allocation5 + $0x360] ss:$16 sps:$4 sm:$0xff]  }
  0x7c   :  { %1482 = vmatpush1.bf16.msra.mxu0 %v3792_v52  ;;  %1646 = vmatpush1.bf16.msra.mxu1 %v3793_v53  ;;  %v3883_v52 = vld [vmem:[#allocation5 + $0x368] ss:$16 sps:$4 sm:$0xff]   ;;  %v3888_v53 = vld [vmem:[#allocation5 + $0x384] ss:$16 sps:$4 sm:$0xff]  }
  0x7d   :  { %1483 = vmatprep.subr.bf16.mxu0 %v3794_v54  ;;  %1647 = vmatprep.subr.bf16.mxu1 %v3796_v55  ;;  %v3891_v54 = vld [vmem:[#allocation5 + $0x38c] ss:$16 sps:$4 sm:$0xff]   ;;  %v3886_v55 = vld [vmem:[#allocation5 + $0x380] ss:$16 sps:$4 sm:$0xff]  }
  0x80   :  { %1484 = vmatpush1.bf16.msra.mxu0 %v3798_v56  ;;  %1648 = vmatpush1.bf16.msra.mxu1 %v3799_v57  ;;  %v3889_v56 = vld [vmem:[#allocation5 + $0x388] ss:$16 sps:$4 sm:$0xff]   ;;  %v3894_v57 = vld [vmem:[#allocation5 + $0x3a4] ss:$16 sps:$4 sm:$0xff]  }
  0x81   :  { %1485 = vmatprep.subr.bf16.mxu0 %v3800_v58  ;;  %1649 = vmatprep.subr.bf16.mxu1 %v3802_v59  ;;  %v3897_v58 = vld [vmem:[#allocation5 + $0x3ac] ss:$16 sps:$4 sm:$0xff]   ;;  %v3892_v59 = vld [vmem:[#allocation5 + $0x3a0] ss:$16 sps:$4 sm:$0xff]  }
  0x84   :  { %1486 = vmatpush1.bf16.msra.mxu0 %v3804_v60  ;;  %1650 = vmatpush1.bf16.msra.mxu1 %v3805_v61  ;;  %v3895_v60 = vld [vmem:[#allocation5 + $0x3a8] ss:$16 sps:$4 sm:$0xff]   ;;  %v3900_v61 = vld [vmem:[#allocation5 + $0x3c4] ss:$16 sps:$4 sm:$0xff]  }
  0x85   :  { %1487 = vmatprep.subr.bf16.mxu0 %v3806_v62  ;;  %1651 = vmatprep.subr.bf16.mxu1 %v3808_v63  ;;  %v3903_v62 = vld [vmem:[#allocation5 + $0x3cc] ss:$16 sps:$4 sm:$0xff]   ;;  %v3898_v63 = vld [vmem:[#allocation5 + $0x3c0] ss:$16 sps:$4 sm:$0xff]  }
  0x88   :  { %1488 = vmatpush1.bf16.msra.mxu0 %v3810_v0  ;;  %1652 = vmatpush1.bf16.msra.mxu1 %v3811_v1  ;;  %v3901_v0 = vld [vmem:[#allocation5 + $0x3c8] ss:$16 sps:$4 sm:$0xff]   ;;  %v3906_v1 = vld [vmem:[#allocation5 + $0x3e4] ss:$16 sps:$4 sm:$0xff]  }
  0x89   :  { %1498 = vmatprep.subr.bf16.mxu0 %v3816_v2  ;;  %1662 = vmatprep.subr.bf16.mxu1 %v3819_v3  ;;  %v3909_v2 = vld [vmem:[#allocation5 + $0x3ec] ss:$16 sps:$4 sm:$0xff]   ;;  %v3904_v3 = vld [vmem:[#allocation5 + $0x3e0] ss:$16 sps:$4 sm:$0xff]  }
  0x8b   :  { %1490 = vmatmul.mubr.bf16.vlgmr.msra.gmra.mrb[0].mxu0 %v3231_v4  ;;  %1654 = vmatmul.mubr.bf16.vlgmr.msra.gmra.mrb[0].mxu1 %v3231_v4  ;;  %v3907_v4 = vld [vmem:[#allocation5 + $0x3e8] ss:$16 sps:$4 sm:$0xff]  }
  0x8c   :  { %1499 = vmatpush1.bf16.msra.mxu0 %v3814_v5  ;;  %1663 = vmatpush1.bf16.msra.mxu1 %v3817_v6  ;;  %v3914_v5 = vld [vmem:[#allocation5 + $0x404] ss:$16 sps:$4 sm:$0xff]   ;;  %v3917_v6 = vld [vmem:[#allocation5 + $0x40c] ss:$16 sps:$4 sm:$0xff]  }
  0x8d   :  { %1500 = vmatprep.subr.bf16.mxu0 %v3822_v7  ;;  %1664 = vmatprep.subr.bf16.mxu1 %v3825_v8  ;;  %v3233_v7 = vcombine.low %v4542_v29, %v4542_v29  ;;  %v3912_v8 = vld [vmem:[#allocation5 + $0x400] ss:$16 sps:$4 sm:$0xff]   ;;  %v3947_v29 = vld [vmem:[#allocation5 + $0x4ac] ss:$16 sps:$4 sm:$0xff]  }
  0x8e   :  { %1530 = vmatprep.mubr.bf16.mxu0 %v3234_v30  ;;  %1694 = vmatprep.mubr.bf16.mxu1 %v3234_v30  ;;  %v3942_v30 = vld [vmem:[#allocation5 + $0x4a0] ss:$16 sps:$4 sm:$0xff]  }
  0x90   :  { %1501 = vmatpush1.bf16.msra.mxu0 %v3820_v9  ;;  %1665 = vmatpush1.bf16.msra.mxu1 %v3823_v10  ;;  %v3915_v9 = vld [vmem:[#allocation5 + $0x408] ss:$16 sps:$4 sm:$0xff]   ;;  %v3920_v10 = vld [vmem:[#allocation5 + $0x424] ss:$16 sps:$4 sm:$0xff]  }
  0x91   :  { %1502 = vmatprep.subr.bf16.mxu0 %v3828_v11  ;;  %1666 = vmatprep.subr.bf16.mxu1 %v3831_v12  ;;  %v4548_v11 = vld [vmem:[#allocation2 + $0x10] sm:$0xff]  ;;  %v3923_v12 = vld [vmem:[#allocation5 + $0x42c] ss:$16 sps:$4 sm:$0xff]  }
  0x94   :  { %1503 = vmatpush1.bf16.msra.mxu0 %v3826_v13  ;;  %1667 = vmatpush1.bf16.msra.mxu1 %v3829_v14  ;;  %v3236_v13 = vcombine.high %v4548_v11, %v4548_v11  ;;  %v3918_v14 = vld [vmem:[#allocation5 + $0x420] ss:$16 sps:$4 sm:$0xff]  }
  0x95   :  { %1504 = vmatprep.subr.bf16.mxu0 %v3834_v15  ;;  %1668 = vmatprep.subr.bf16.mxu1 %v3837_v16  ;;  %v3921_v15 = vld [vmem:[#allocation5 + $0x428] ss:$16 sps:$4 sm:$0xff]   ;;  %v3926_v16 = vld [vmem:[#allocation5 + $0x444] ss:$16 sps:$4 sm:$0xff]  }
  0x98   :  { %1505 = vmatpush1.bf16.msra.mxu0 %v3832_v17  ;;  %1669 = vmatpush1.bf16.msra.mxu1 %v3835_v18  ;;  %v3929_v17 = vld [vmem:[#allocation5 + $0x44c] ss:$16 sps:$4 sm:$0xff]   ;;  %v3924_v18 = vld [vmem:[#allocation5 + $0x440] ss:$16 sps:$4 sm:$0xff]  }
  0x99   :  { %1506 = vmatprep.subr.bf16.mxu0 %v3840_v19  ;;  %1670 = vmatprep.subr.bf16.mxu1 %v3843_v20  ;;  %v3927_v19 = vld [vmem:[#allocation5 + $0x448] ss:$16 sps:$4 sm:$0xff]   ;;  %v3932_v20 = vld [vmem:[#allocation5 + $0x464] ss:$16 sps:$4 sm:$0xff]  }
  0x9c   :  { %1507 = vmatpush1.bf16.msra.mxu0 %v3838_v21  ;;  %1671 = vmatpush1.bf16.msra.mxu1 %v3841_v22  ;;  %v3935_v21 = vld [vmem:[#allocation5 + $0x46c] ss:$16 sps:$4 sm:$0xff]   ;;  %v3930_v22 = vld [vmem:[#allocation5 + $0x460] ss:$16 sps:$4 sm:$0xff]  }
  0x9d   :  { %1508 = vmatprep.subr.bf16.mxu0 %v3846_v23  ;;  %1672 = vmatprep.subr.bf16.mxu1 %v3849_v24  ;;  %v3933_v23 = vld [vmem:[#allocation5 + $0x468] ss:$16 sps:$4 sm:$0xff]   ;;  %v3938_v24 = vld [vmem:[#allocation5 + $0x484] ss:$16 sps:$4 sm:$0xff]  }
  0xa0   :  { %1509 = vmatpush1.bf16.msra.mxu0 %v3844_v25  ;;  %1673 = vmatpush1.bf16.msra.mxu1 %v3847_v26  ;;  %v3941_v25 = vld [vmem:[#allocation5 + $0x48c] ss:$16 sps:$4 sm:$0xff]   ;;  %v3936_v26 = vld [vmem:[#allocation5 + $0x480] ss:$16 sps:$4 sm:$0xff]  }
  0xa1   :  { %1510 = vmatprep.subr.bf16.mxu0 %v3852_v27  ;;  %1674 = vmatprep.subr.bf16.mxu1 %v3855_v28  ;;  %v3939_v27 = vld [vmem:[#allocation5 + $0x488] ss:$16 sps:$4 sm:$0xff]   ;;  %v3944_v28 = vld [vmem:[#allocation5 + $0x4a4] ss:$16 sps:$4 sm:$0xff]  }
  0xa4   :  { %1511 = vmatpush1.bf16.msra.mxu0 %v3850_v31  ;;  %1675 = vmatpush1.bf16.msra.mxu1 %v3853_v32  ;;  %v3945_v31 = vld [vmem:[#allocation5 + $0x4a8] ss:$16 sps:$4 sm:$0xff]   ;;  %v3950_v32 = vld [vmem:[#allocation5 + $0x4c4] ss:$16 sps:$4 sm:$0xff]  }
  0xa5   :  { %1512 = vmatprep.subr.bf16.mxu0 %v3858_v33  ;;  %1676 = vmatprep.subr.bf16.mxu1 %v3861_v34  ;;  %v3953_v33 = vld [vmem:[#allocation5 + $0x4cc] ss:$16 sps:$4 sm:$0xff]   ;;  %v3948_v34 = vld [vmem:[#allocation5 + $0x4c0] ss:$16 sps:$4 sm:$0xff]  }
  0xa8   :  { %1513 = vmatpush1.bf16.msra.mxu0 %v3856_v35  ;;  %1677 = vmatpush1.bf16.msra.mxu1 %v3859_v36  ;;  %v3951_v35 = vld [vmem:[#allocation5 + $0x4c8] ss:$16 sps:$4 sm:$0xff]   ;;  %v3956_v36 = vld [vmem:[#allocation5 + $0x4e4] ss:$16 sps:$4 sm:$0xff]  }
  0xa9   :  { %1514 = vmatprep.subr.bf16.mxu0 %v3864_v37  ;;  %1678 = vmatprep.subr.bf16.mxu1 %v3867_v38  ;;  %v3959_v37 = vld [vmem:[#allocation5 + $0x4ec] ss:$16 sps:$4 sm:$0xff]   ;;  %v3954_v38 = vld [vmem:[#allocation5 + $0x4e0] ss:$16 sps:$4 sm:$0xff]  }
  0xac   :  { %1515 = vmatpush1.bf16.msra.mxu0 %v3862_v39  ;;  %1679 = vmatpush1.bf16.msra.mxu1 %v3865_v40  ;;  %v3957_v39 = vld [vmem:[#allocation5 + $0x4e8] ss:$16 sps:$4 sm:$0xff]   ;;  %v3962_v40 = vld [vmem:[#allocation5 + $0x504] ss:$16 sps:$4 sm:$0xff]  }
  0xad   :  { %1516 = vmatprep.subr.bf16.mxu0 %v3870_v41  ;;  %1680 = vmatprep.subr.bf16.mxu1 %v3873_v42  ;;  %v3965_v41 = vld [vmem:[#allocation5 + $0x50c] ss:$16 sps:$4 sm:$0xff]   ;;  %v3960_v42 = vld [vmem:[#allocation5 + $0x500] ss:$16 sps:$4 sm:$0xff]  }
  0xb0   :  { %1517 = vmatpush1.bf16.msra.mxu0 %v3868_v43  ;;  %1681 = vmatpush1.bf16.msra.mxu1 %v3871_v44  ;;  %v3963_v43 = vld [vmem:[#allocation5 + $0x508] ss:$16 sps:$4 sm:$0xff]   ;;  %v3968_v44 = vld [vmem:[#allocation5 + $0x524] ss:$16 sps:$4 sm:$0xff]  }
  0xb1   :  { %1518 = vmatprep.subr.bf16.mxu0 %v3876_v45  ;;  %1682 = vmatprep.subr.bf16.mxu1 %v3879_v46  ;;  %v3971_v45 = vld [vmem:[#allocation5 + $0x52c] ss:$16 sps:$4 sm:$0xff]   ;;  %v3966_v46 = vld [vmem:[#allocation5 + $0x520] ss:$16 sps:$4 sm:$0xff]  }
  0xb4   :  { %1519 = vmatpush1.bf16.msra.mxu0 %v3874_v47  ;;  %1683 = vmatpush1.bf16.msra.mxu1 %v3877_v48  ;;  %v3969_v47 = vld [vmem:[#allocation5 + $0x528] ss:$16 sps:$4 sm:$0xff]   ;;  %v3974_v48 = vld [vmem:[#allocation5 + $0x544] ss:$16 sps:$4 sm:$0xff]  }
  0xb5   :  { %1520 = vmatprep.subr.bf16.mxu0 %v3882_v49  ;;  %1684 = vmatprep.subr.bf16.mxu1 %v3885_v50  ;;  %v3977_v49 = vld [vmem:[#allocation5 + $0x54c] ss:$16 sps:$4 sm:$0xff]   ;;  %v3972_v50 = vld [vmem:[#allocation5 + $0x540] ss:$16 sps:$4 sm:$0xff]  }
  0xb8   :  { %1521 = vmatpush1.bf16.msra.mxu0 %v3880_v51  ;;  %1685 = vmatpush1.bf16.msra.mxu1 %v3883_v52  ;;  %v3975_v51 = vld [vmem:[#allocation5 + $0x548] ss:$16 sps:$4 sm:$0xff]   ;;  %v3980_v52 = vld [vmem:[#allocation5 + $0x564] ss:$16 sps:$4 sm:$0xff]  }
  0xb9   :  { %1522 = vmatprep.subr.bf16.mxu0 %v3888_v53  ;;  %1686 = vmatprep.subr.bf16.mxu1 %v3891_v54  ;;  %v3983_v53 = vld [vmem:[#allocation5 + $0x56c] ss:$16 sps:$4 sm:$0xff]   ;;  %v3978_v54 = vld [vmem:[#allocation5 + $0x560] ss:$16 sps:$4 sm:$0xff]  }
  0xbc   :  { %1523 = vmatpush1.bf16.msra.mxu0 %v3886_v55  ;;  %1687 = vmatpush1.bf16.msra.mxu1 %v3889_v56  ;;  %v3981_v55 = vld [vmem:[#allocation5 + $0x568] ss:$16 sps:$4 sm:$0xff]   ;;  %v3986_v56 = vld [vmem:[#allocation5 + $0x584] ss:$16 sps:$4 sm:$0xff]  }
  0xbd   :  { %1524 = vmatprep.subr.bf16.mxu0 %v3894_v57  ;;  %1688 = vmatprep.subr.bf16.mxu1 %v3897_v58  ;;  %v3989_v57 = vld [vmem:[#allocation5 + $0x58c] ss:$16 sps:$4 sm:$0xff]   ;;  %v3984_v58 = vld [vmem:[#allocation5 + $0x580] ss:$16 sps:$4 sm:$0xff]  }
  0xc0   :  { %1525 = vmatpush1.bf16.msra.mxu0 %v3892_v59  ;;  %1689 = vmatpush1.bf16.msra.mxu1 %v3895_v60  ;;  %v3987_v59 = vld [vmem:[#allocation5 + $0x588] ss:$16 sps:$4 sm:$0xff]   ;;  %v3992_v60 = vld [vmem:[#allocation5 + $0x5a4] ss:$16 sps:$4 sm:$0xff]  }
  0xc1   :  { %1526 = vmatprep.subr.bf16.mxu0 %v3900_v61  ;;  %1690 = vmatprep.subr.bf16.mxu1 %v3903_v62  ;;  %v3995_v61 = vld [vmem:[#allocation5 + $0x5ac] ss:$16 sps:$4 sm:$0xff]   ;;  %v3990_v62 = vld [vmem:[#allocation5 + $0x5a0] ss:$16 sps:$4 sm:$0xff]  }
  0xc4   :  { %1527 = vmatpush1.bf16.msra.mxu0 %v3898_v63  ;;  %1691 = vmatpush1.bf16.msra.mxu1 %v3901_v0  ;;  %v3993_v63 = vld [vmem:[#allocation5 + $0x5a8] ss:$16 sps:$4 sm:$0xff]   ;;  %v3998_v0 = vld [vmem:[#allocation5 + $0x5c4] ss:$16 sps:$4 sm:$0xff]  }
  0xc5   :  { %1528 = vmatprep.subr.bf16.mxu0 %v3906_v1  ;;  %1692 = vmatprep.subr.bf16.mxu1 %v3909_v2  ;;  %v4001_v1 = vld [vmem:[#allocation5 + $0x5cc] ss:$16 sps:$4 sm:$0xff]   ;;  %v3996_v2 = vld [vmem:[#allocation5 + $0x5c0] ss:$16 sps:$4 sm:$0xff]  }
  0xc8   :  { %1529 = vmatpush1.bf16.msra.mxu0 %v3904_v3  ;;  %1693 = vmatpush1.bf16.msra.mxu1 %v3907_v4  ;;  %v3999_v3 = vld [vmem:[#allocation5 + $0x5c8] ss:$16 sps:$4 sm:$0xff]   ;;  %v4004_v4 = vld [vmem:[#allocation5 + $0x5e4] ss:$16 sps:$4 sm:$0xff]  }
  0xc9   :  { %1539 = vmatprep.subr.bf16.mxu0 %v3914_v5  ;;  %1703 = vmatprep.subr.bf16.mxu1 %v3917_v6  ;;  %v4007_v5 = vld [vmem:[#allocation5 + $0x5ec] ss:$16 sps:$4 sm:$0xff]   ;;  %v4002_v6 = vld [vmem:[#allocation5 + $0x5e0] ss:$16 sps:$4 sm:$0xff]  }
  0xcb   :  { %1531 = vmatmul.mubr.bf16.vlgmr.msra.gmra.mrb[0].mxu0 %v3233_v7  ;;  %1695 = vmatmul.mubr.bf16.vlgmr.msra.gmra.mrb[0].mxu1 %v3233_v7  ;;  %v4005_v7 = vld [vmem:[#allocation5 + $0x5e8] ss:$16 sps:$4 sm:$0xff]  }
  0xcc   :  { %1540 = vmatpush1.bf16.msra.mxu0 %v3912_v8  ;;  %1704 = vmatpush1.bf16.msra.mxu1 %v3915_v9  ;;  %v4012_v8 = vld [vmem:[#allocation5 + $0x604] ss:$16 sps:$4 sm:$0xff]   ;;  %v4015_v9 = vld [vmem:[#allocation5 + $0x60c] ss:$16 sps:$4 sm:$0xff]  }
  0xcd   :  { %1541 = vmatprep.subr.bf16.mxu0 %v3920_v10  ;;  %1705 = vmatprep.subr.bf16.mxu1 %v3923_v12  ;;  %v4010_v10 = vld [vmem:[#allocation5 + $0x600] ss:$16 sps:$4 sm:$0xff]   ;;  %v4013_v12 = vld [vmem:[#allocation5 + $0x608] ss:$16 sps:$4 sm:$0xff]  }
  0xce   :  { %1571 = vmatprep.mubr.bf16.mxu0 %v3236_v13  ;;  %1735 = vmatprep.mubr.bf16.mxu1 %v3236_v13  ;;  %v3235_v13 = vcombine.low %v4548_v11, %v4548_v11  ;;  %v4030_v11 = vld [vmem:[#allocation5 + $0x664] ss:$16 sps:$4 sm:$0xff]  }
  0xd0   :  { %1542 = vmatpush1.bf16.msra.mxu0 %v3918_v14  ;;  %1706 = vmatpush1.bf16.msra.mxu1 %v3921_v15  ;;  %v4018_v14 = vld [vmem:[#allocation5 + $0x624] ss:$16 sps:$4 sm:$0xff]   ;;  %v4021_v15 = vld [vmem:[#allocation5 + $0x62c] ss:$16 sps:$4 sm:$0xff]  }
  0xd1   :  { %1543 = vmatprep.subr.bf16.mxu0 %v3926_v16  ;;  %1707 = vmatprep.subr.bf16.mxu1 %v3929_v17  ;;  %v4016_v16 = vld [vmem:[#allocation5 + $0x620] ss:$16 sps:$4 sm:$0xff]   ;;  %v4019_v17 = vld [vmem:[#allocation5 + $0x628] ss:$16 sps:$4 sm:$0xff]  }
  0xd4   :  { %1544 = vmatpush1.bf16.msra.mxu0 %v3924_v18  ;;  %1708 = vmatpush1.bf16.msra.mxu1 %v3927_v19  ;;  %v4024_v18 = vld [vmem:[#allocation5 + $0x644] ss:$16 sps:$4 sm:$0xff]   ;;  %v4027_v19 = vld [vmem:[#allocation5 + $0x64c] ss:$16 sps:$4 sm:$0xff]  }
  0xd5   :  { %1545 = vmatprep.subr.bf16.mxu0 %v3932_v20  ;;  %1709 = vmatprep.subr.bf16.mxu1 %v3935_v21  ;;  %v4022_v20 = vld [vmem:[#allocation5 + $0x640] ss:$16 sps:$4 sm:$0xff]   ;;  %v4025_v21 = vld [vmem:[#allocation5 + $0x648] ss:$16 sps:$4 sm:$0xff]  }
  0xd8   :  { %1546 = vmatpush1.bf16.msra.mxu0 %v3930_v22  ;;  %1710 = vmatpush1.bf16.msra.mxu1 %v3933_v23  ;;  %v4441_v22 = vmov 0   ;;  %v4033_v23 = vld [vmem:[#allocation5 + $0x66c] ss:$16 sps:$4 sm:$0xff]  }
  0xd9   :  { %1547 = vmatprep.subr.bf16.mxu0 %v3938_v24  ;;  %1711 = vmatprep.subr.bf16.mxu1 %v3941_v25  ;;  %v4028_v24 = vld [vmem:[#allocation5 + $0x660] ss:$16 sps:$4 sm:$0xff]   ;;  %v4031_v25 = vld [vmem:[#allocation5 + $0x668] ss:$16 sps:$4 sm:$0xff]  }
  0xdc   :  { %1548 = vmatpush1.bf16.msra.mxu0 %v3936_v26  ;;  %1712 = vmatpush1.bf16.msra.mxu1 %v3939_v27  ;;  %v4036_v26 = vld [vmem:[#allocation5 + $0x684] ss:$16 sps:$4 sm:$0xff]   ;;  %v4039_v27 = vld [vmem:[#allocation5 + $0x68c] ss:$16 sps:$4 sm:$0xff]  }
  0xdd   :  { %1549 = vmatprep.subr.bf16.mxu0 %v3944_v28  ;;  %1713 = vmatprep.subr.bf16.mxu1 %v3947_v29  ;;  %v4034_v28 = vld [vmem:[#allocation5 + $0x680] ss:$16 sps:$4 sm:$0xff]   ;;  %v4037_v29 = vld [vmem:[#allocation5 + $0x688] ss:$16 sps:$4 sm:$0xff]  }
  0xe0   :  { %1550 = vmatpush1.bf16.msra.mxu0 %v3942_v30  ;;  %1714 = vmatpush1.bf16.msra.mxu1 %v3945_v31  ;;  %v4042_v30 = vld [vmem:[#allocation5 + $0x6a4] ss:$16 sps:$4 sm:$0xff]   ;;  %v4045_v31 = vld [vmem:[#allocation5 + $0x6ac] ss:$16 sps:$4 sm:$0xff]  }
  0xe1   :  { %1551 = vmatprep.subr.bf16.mxu0 %v3950_v32  ;;  %1715 = vmatprep.subr.bf16.mxu1 %v3953_v33  ;;  %v4040_v32 = vld [vmem:[#allocation5 + $0x6a0] ss:$16 sps:$4 sm:$0xff]   ;;  %v4043_v33 = vld [vmem:[#allocation5 + $0x6a8] ss:$16 sps:$4 sm:$0xff]  }
  0xe4   :  { %1552 = vmatpush1.bf16.msra.mxu0 %v3948_v34  ;;  %1716 = vmatpush1.bf16.msra.mxu1 %v3951_v35  ;;  %v4048_v34 = vld [vmem:[#allocation5 + $0x6c4] ss:$16 sps:$4 sm:$0xff]   ;;  %v4051_v35 = vld [vmem:[#allocation5 + $0x6cc] ss:$16 sps:$4 sm:$0xff]  }
  0xe5   :  { %1553 = vmatprep.subr.bf16.mxu0 %v3956_v36  ;;  %1717 = vmatprep.subr.bf16.mxu1 %v3959_v37  ;;  %v4046_v36 = vld [vmem:[#allocation5 + $0x6c0] ss:$16 sps:$4 sm:$0xff]   ;;  %v4049_v37 = vld [vmem:[#allocation5 + $0x6c8] ss:$16 sps:$4 sm:$0xff]  }
  0xe8   :  { %1554 = vmatpush1.bf16.msra.mxu0 %v3954_v38  ;;  %1718 = vmatpush1.bf16.msra.mxu1 %v3957_v39  ;;  %v4054_v38 = vld [vmem:[#allocation5 + $0x6e4] ss:$16 sps:$4 sm:$0xff]   ;;  %v4057_v39 = vld [vmem:[#allocation5 + $0x6ec] ss:$16 sps:$4 sm:$0xff]  }
  0xe9   :  { %1555 = vmatprep.subr.bf16.mxu0 %v3962_v40  ;;  %1719 = vmatprep.subr.bf16.mxu1 %v3965_v41  ;;  %v4052_v40 = vld [vmem:[#allocation5 + $0x6e0] ss:$16 sps:$4 sm:$0xff]   ;;  %v4055_v41 = vld [vmem:[#allocation5 + $0x6e8] ss:$16 sps:$4 sm:$0xff]  }
  0xec   :  { %1556 = vmatpush1.bf16.msra.mxu0 %v3960_v42  ;;  %1720 = vmatpush1.bf16.msra.mxu1 %v3963_v43  ;;  %v4061_v42 = vld [vmem:[#allocation7 + $0x4] ss:$16 sps:$4 sm:$0xff]   ;;  %v4064_v43 = vld [vmem:[#allocation7 + $0xc] ss:$16 sps:$4 sm:$0xff]  }
  0xed   :  { %1557 = vmatprep.subr.bf16.mxu0 %v3968_v44  ;;  %1721 = vmatprep.subr.bf16.mxu1 %v3971_v45  ;;  %v4058_v44 = vld [vmem:[#allocation2 + $0x18] ss:$0 sps:$4 sm:$0xff]   ;;  %v4059_v45 = vld [vmem:[#allocation7] ss:$16 sps:$4 sm:$0xff]  }
  0xf0   :  { %1558 = vmatpush1.bf16.msra.mxu0 %v3966_v46  ;;  %1722 = vmatpush1.bf16.msra.mxu1 %v3969_v47  ;;  %v4062_v46 = vld [vmem:[#allocation7 + $0x8] ss:$16 sps:$4 sm:$0xff]   ;;  %v4067_v47 = vld [vmem:[#allocation7 + $0x24] ss:$16 sps:$4 sm:$0xff]  }
  0xf1   :  { %1559 = vmatprep.subr.bf16.mxu0 %v3974_v48  ;;  %1723 = vmatprep.subr.bf16.mxu1 %v3977_v49  ;;  %v4070_v48 = vld [vmem:[#allocation7 + $0x2c] ss:$16 sps:$4 sm:$0xff]   ;;  %v4065_v49 = vld [vmem:[#allocation7 + $0x20] ss:$16 sps:$4 sm:$0xff]  }
  0xf4   :  { %1560 = vmatpush1.bf16.msra.mxu0 %v3972_v50  ;;  %1724 = vmatpush1.bf16.msra.mxu1 %v3975_v51  ;;  %v4068_v50 = vld [vmem:[#allocation7 + $0x28] ss:$16 sps:$4 sm:$0xff]   ;;  %v4073_v51 = vld [vmem:[#allocation7 + $0x44] ss:$16 sps:$4 sm:$0xff]  }
  0xf5   :  { %1561 = vmatprep.subr.bf16.mxu0 %v3980_v52  ;;  %1725 = vmatprep.subr.bf16.mxu1 %v3983_v53  ;;  %v4076_v52 = vld [vmem:[#allocation7 + $0x4c] ss:$16 sps:$4 sm:$0xff]   ;;  %v4071_v53 = vld [vmem:[#allocation7 + $0x40] ss:$16 sps:$4 sm:$0xff]  }
  0xf8   :  { %1562 = vmatpush1.bf16.msra.mxu0 %v3978_v54  ;;  %1726 = vmatpush1.bf16.msra.mxu1 %v3981_v55  ;;  %v4074_v54 = vld [vmem:[#allocation7 + $0x48] ss:$16 sps:$4 sm:$0xff]   ;;  %v4079_v55 = vld [vmem:[#allocation7 + $0x64] ss:$16 sps:$4 sm:$0xff]  }
  0xf9   :  { %1563 = vmatprep.subr.bf16.mxu0 %v3986_v56  ;;  %1727 = vmatprep.subr.bf16.mxu1 %v3989_v57  ;;  %v4082_v56 = vld [vmem:[#allocation7 + $0x6c] ss:$16 sps:$4 sm:$0xff]   ;;  %v4077_v57 = vld [vmem:[#allocation7 + $0x60] ss:$16 sps:$4 sm:$0xff]  }
  0xfc   :  { %1564 = vmatpush1.bf16.msra.mxu0 %v3984_v58  ;;  %1728 = vmatpush1.bf16.msra.mxu1 %v3987_v59  ;;  %v4080_v58 = vld [vmem:[#allocation7 + $0x68] ss:$16 sps:$4 sm:$0xff]   ;;  %v4085_v59 = vld [vmem:[#allocation7 + $0x84] ss:$16 sps:$4 sm:$0xff]  }
  0xfd   :  { %1565 = vmatprep.subr.bf16.mxu0 %v3992_v60  ;;  %1729 = vmatprep.subr.bf16.mxu1 %v3995_v61  ;;  %v4088_v60 = vld [vmem:[#allocation7 + $0x8c] ss:$16 sps:$4 sm:$0xff]   ;;  %v4083_v61 = vld [vmem:[#allocation7 + $0x80] ss:$16 sps:$4 sm:$0xff]  }
 0x100   :  { %1566 = vmatpush1.bf16.msra.mxu0 %v3990_v62  ;;  %1730 = vmatpush1.bf16.msra.mxu1 %v3993_v63  ;;  %v4086_v62 = vld [vmem:[#allocation7 + $0x88] ss:$16 sps:$4 sm:$0xff]   ;;  %v4091_v63 = vld [vmem:[#allocation7 + $0xa4] ss:$16 sps:$4 sm:$0xff]  }
 0x101   :  { %1567 = vmatprep.subr.bf16.mxu0 %v3998_v0  ;;  %1731 = vmatprep.subr.bf16.mxu1 %v4001_v1  ;;  %v4094_v0 = vld [vmem:[#allocation7 + $0xac] ss:$16 sps:$4 sm:$0xff]   ;;  %v4089_v1 = vld [vmem:[#allocation7 + $0xa0] ss:$16 sps:$4 sm:$0xff]  }
 0x104   :  { %1568 = vmatpush1.bf16.msra.mxu0 %v3996_v2  ;;  %1732 = vmatpush1.bf16.msra.mxu1 %v3999_v3  ;;  %v4092_v2 = vld [vmem:[#allocation7 + $0xa8] ss:$16 sps:$4 sm:$0xff]   ;;  %v4097_v3 = vld [vmem:[#allocation7 + $0xc4] ss:$16 sps:$4 sm:$0xff]  }
 0x105   :  { %1569 = vmatprep.subr.bf16.mxu0 %v4004_v4  ;;  %1733 = vmatprep.subr.bf16.mxu1 %v4007_v5  ;;  %v4100_v4 = vld [vmem:[#allocation7 + $0xcc] ss:$16 sps:$4 sm:$0xff]   ;;  %v4095_v5 = vld [vmem:[#allocation7 + $0xc0] ss:$16 sps:$4 sm:$0xff]  }
 0x108   :  { %1570 = vmatpush1.bf16.msra.mxu0 %v4002_v6  ;;  %1734 = vmatpush1.bf16.msra.mxu1 %v4005_v7  ;;  %v4098_v6 = vld [vmem:[#allocation7 + $0xc8] ss:$16 sps:$4 sm:$0xff]   ;;  %v4103_v7 = vld [vmem:[#allocation7 + $0xe4] ss:$16 sps:$4 sm:$0xff]  }
 0x109   :  { %1580 = vmatprep.subr.bf16.mxu0 %v4012_v8  ;;  %1744 = vmatprep.subr.bf16.mxu1 %v4015_v9  ;;  %v4106_v8 = vld [vmem:[#allocation7 + $0xec] ss:$16 sps:$4 sm:$0xff]   ;;  %v4101_v9 = vld [vmem:[#allocation7 + $0xe0] ss:$16 sps:$4 sm:$0xff]  }
 0x10b   :  { %1572 = vmatmul.mubr.bf16.vlgmr.msra.gmra.mrb[0].mxu0 %v3235_v13  ;;  %1736 = vmatmul.mubr.bf16.vlgmr.msra.gmra.mrb[0].mxu1 %v3235_v13  ;;  %v4112_v13 = vld [vmem:[#allocation7 + $0x10c] ss:$16 sps:$4 sm:$0xff]  }
 0x10c   :  { %1581 = vmatpush1.bf16.msra.mxu0 %v4010_v10  ;;  %1745 = vmatpush1.bf16.msra.mxu1 %v4013_v12  ;;  %v4104_v10 = vld [vmem:[#allocation7 + $0xe8] ss:$16 sps:$4 sm:$0xff]   ;;  %v4109_v12 = vld [vmem:[#allocation7 + $0x104] ss:$16 sps:$4 sm:$0xff]  }
 0x10d   :  { %1582 = vmatprep.subr.bf16.mxu0 %v4018_v14  ;;  %1746 = vmatprep.subr.bf16.mxu1 %v4021_v15  ;;  %v4107_v14 = vld [vmem:[#allocation7 + $0x100] ss:$16 sps:$4 sm:$0xff]   ;;  %v4110_v15 = vld [vmem:[#allocation7 + $0x108] ss:$16 sps:$4 sm:$0xff]  }
 0x10e   :  { %1612 = vmatprep.mubr.bf16.mxu0 %v4441_v22  ;;  %1776 = vmatprep.mubr.bf16.mxu1 %v4441_v22  ;;  %v4119_v22 = vld [vmem:[#allocation7 + $0x140] ss:$16 sps:$4 sm:$0xff]  }
 0x110   :  { %1583 = vmatpush1.bf16.msra.mxu0 %v4016_v16  ;;  %1747 = vmatpush1.bf16.msra.mxu1 %v4019_v17  ;;  %v4115_v16 = vld [vmem:[#allocation7 + $0x124] ss:$16 sps:$4 sm:$0xff]   ;;  %v4118_v17 = vld [vmem:[#allocation7 + $0x12c] ss:$16 sps:$4 sm:$0xff]  }
 0x111   :  { %1584 = vmatprep.subr.bf16.mxu0 %v4024_v18  ;;  %1748 = vmatprep.subr.bf16.mxu1 %v4027_v19  ;;  %v4113_v18 = vld [vmem:[#allocation7 + $0x120] ss:$16 sps:$4 sm:$0xff]   ;;  %v4116_v19 = vld [vmem:[#allocation7 + $0x128] ss:$16 sps:$4 sm:$0xff]  }
 0x114   :  { %1585 = vmatpush1.bf16.msra.mxu0 %v4022_v20  ;;  %1749 = vmatpush1.bf16.msra.mxu1 %v4025_v21  ;;  %v4121_v20 = vld [vmem:[#allocation7 + $0x144] ss:$16 sps:$4 sm:$0xff]   ;;  %v4124_v21 = vld [vmem:[#allocation7 + $0x14c] ss:$16 sps:$4 sm:$0xff]  }
 0x115   :  { %1586 = vmatprep.subr.bf16.mxu0 %v4030_v11  ;;  %1750 = vmatprep.subr.bf16.mxu1 %v4033_v23  ;;  %v4122_v11 = vld [vmem:[#allocation7 + $0x148] ss:$16 sps:$4 sm:$0xff]   ;;  %v4127_v23 = vld [vmem:[#allocation7 + $0x164] ss:$16 sps:$4 sm:$0xff]  }
 0x118   :  { %1587 = vmatpush1.bf16.msra.mxu0 %v4028_v24  ;;  %1751 = vmatpush1.bf16.msra.mxu1 %v4031_v25  ;;  %v4130_v24 = vld [vmem:[#allocation7 + $0x16c] ss:$16 sps:$4 sm:$0xff]   ;;  %v4125_v25 = vld [vmem:[#allocation7 + $0x160] ss:$16 sps:$4 sm:$0xff]  }
 0x119   :  { %1588 = vmatprep.subr.bf16.mxu0 %v4036_v26  ;;  %1752 = vmatprep.subr.bf16.mxu1 %v4039_v27  ;;  %v4128_v26 = vld [vmem:[#allocation7 + $0x168] ss:$16 sps:$4 sm:$0xff]   ;;  %v4133_v27 = vld [vmem:[#allocation7 + $0x184] ss:$16 sps:$4 sm:$0xff]  }
 0x11c   :  { %1589 = vmatpush1.bf16.msra.mxu0 %v4034_v28  ;;  %1753 = vmatpush1.bf16.msra.mxu1 %v4037_v29  ;;  %v4136_v28 = vld [vmem:[#allocation7 + $0x18c] ss:$16 sps:$4 sm:$0xff]   ;;  %v4131_v29 = vld [vmem:[#allocation7 + $0x180] ss:$16 sps:$4 sm:$0xff]  }
 0x11d   :  { %1590 = vmatprep.subr.bf16.mxu0 %v4042_v30  ;;  %1754 = vmatprep.subr.bf16.mxu1 %v4045_v31  ;;  %v4134_v30 = vld [vmem:[#allocation7 + $0x188] ss:$16 sps:$4 sm:$0xff]   ;;  %v4139_v31 = vld [vmem:[#allocation7 + $0x1a4] ss:$16 sps:$4 sm:$0xff]  }
 0x120   :  { %1591 = vmatpush1.bf16.msra.mxu0 %v4040_v32  ;;  %1755 = vmatpush1.bf16.msra.mxu1 %v4043_v33  ;;  %v4142_v32 = vld [vmem:[#allocation7 + $0x1ac] ss:$16 sps:$4 sm:$0xff]   ;;  %v4137_v33 = vld [vmem:[#allocation7 + $0x1a0] ss:$16 sps:$4 sm:$0xff]  }
 0x121   :  { %1592 = vmatprep.subr.bf16.mxu0 %v4048_v34  ;;  %1756 = vmatprep.subr.bf16.mxu1 %v4051_v35  ;;  %v4140_v34 = vld [vmem:[#allocation7 + $0x1a8] ss:$16 sps:$4 sm:$0xff]   ;;  %v4145_v35 = vld [vmem:[#allocation7 + $0x1c4] ss:$16 sps:$4 sm:$0xff]  }
 0x124   :  { %1593 = vmatpush1.bf16.msra.mxu0 %v4046_v36  ;;  %1757 = vmatpush1.bf16.msra.mxu1 %v4049_v37  ;;  %v4148_v36 = vld [vmem:[#allocation7 + $0x1cc] ss:$16 sps:$4 sm:$0xff]   ;;  %v4143_v37 = vld [vmem:[#allocation7 + $0x1c0] ss:$16 sps:$4 sm:$0xff]  }
 0x125   :  { %1594 = vmatprep.subr.bf16.mxu0 %v4054_v38  ;;  %1758 = vmatprep.subr.bf16.mxu1 %v4057_v39  ;;  %v4146_v38 = vld [vmem:[#allocation7 + $0x1c8] ss:$16 sps:$4 sm:$0xff]   ;;  %v4151_v39 = vld [vmem:[#allocation7 + $0x1e4] ss:$16 sps:$4 sm:$0xff]  }
 0x128   :  { %1595 = vmatpush1.bf16.msra.mxu0 %v4052_v40  ;;  %1759 = vmatpush1.bf16.msra.mxu1 %v4055_v41  ;;  %v4154_v40 = vld [vmem:[#allocation7 + $0x1ec] ss:$16 sps:$4 sm:$0xff]   ;;  %v4149_v41 = vld [vmem:[#allocation7 + $0x1e0] ss:$16 sps:$4 sm:$0xff]  }
 0x129   :  { %2633 = vmatprep.subr.bf16.mxu0 %v4061_v42  ;;  %2715 = vmatprep.subr.bf16.mxu1 %v4064_v43  ;;  %v4152_v42 = vld [vmem:[#allocation7 + $0x1e8] ss:$16 sps:$4 sm:$0xff]   ;;  %v4157_v43 = vld [vmem:[#allocation7 + $0x204] ss:$16 sps:$4 sm:$0xff]  }
 0x12b   :  { %1613 = vmatmul.mubr.bf16.vlgmr.msra.gmra.mrb[0].mxu0 %v4058_v44  ;;  %1777 = vmatmul.mubr.bf16.vlgmr.msra.gmra.mrb[0].mxu1 %v4058_v44  ;;  %v4160_v44 = vld [vmem:[#allocation7 + $0x20c] ss:$16 sps:$4 sm:$0xff]  }
 0x12c   :  { %2634 = vmatpush1.bf16.msra.mxu0 %v4059_v45  ;;  %2716 = vmatpush1.bf16.msra.mxu1 %v4062_v46 }
 0x12d   :  { %2635 = vmatprep.subr.bf16.mxu0 %v4067_v47  ;;  %2717 = vmatprep.subr.bf16.mxu1 %v4070_v48 }
 0x130   :  { %2636 = vmatpush1.bf16.msra.mxu0 %v4065_v49  ;;  %2718 = vmatpush1.bf16.msra.mxu1 %v4068_v50 }
 0x131   :  { %2637 = vmatprep.subr.bf16.mxu0 %v4073_v51  ;;  %2719 = vmatprep.subr.bf16.mxu1 %v4076_v52 }
 0x134   :  { %2638 = vmatpush1.bf16.msra.mxu0 %v4071_v53  ;;  %2720 = vmatpush1.bf16.msra.mxu1 %v4074_v54 }
 0x135   :  { %2639 = vmatprep.subr.bf16.mxu0 %v4079_v55  ;;  %2721 = vmatprep.subr.bf16.mxu1 %v4082_v56 }
 0x138   :  { %2640 = vmatpush1.bf16.msra.mxu0 %v4077_v57  ;;  %2722 = vmatpush1.bf16.msra.mxu1 %v4080_v58  ;;  %v1811_v57 = vlaneseq }
 0x139   :  { %2641 = vmatprep.subr.bf16.mxu0 %v4085_v59  ;;  %2723 = vmatprep.subr.bf16.mxu1 %v4088_v60 }
 0x13c   :  { %2642 = vmatpush1.bf16.msra.mxu0 %v4083_v61  ;;  %2724 = vmatpush1.bf16.msra.mxu1 %v4086_v62 }
 0x13d   :  { %2643 = vmatprep.subr.bf16.mxu0 %v4091_v63  ;;  %2725 = vmatprep.subr.bf16.mxu1 %v4094_v0  ;;  %v1812_v63 = vshrl.u32 %v1811_v57, 7  ;;  %v4194_v57 = vld [vmem:[#allocation7 + $0x2c8] ss:$16 sps:$4 sm:$0xff]  }
 0x140   :  { %2644 = vmatpush1.bf16.msra.mxu0 %v4089_v1  ;;  %2726 = vmatpush1.bf16.msra.mxu1 %v4092_v2 }
 0x141   :  { %2645 = vmatprep.subr.bf16.mxu0 %v4097_v3  ;;  %2727 = vmatprep.subr.bf16.mxu1 %v4100_v4  ;;  %v4554_v3 = vsub.s32 0, %v1812_v63  ;;  %v1809_v4 = vld [vmem:[%s4608_s2] sm:$0xf] }
 0x144   :  { %2646 = vmatpush1.bf16.msra.mxu0 %v4095_v5  ;;  %2728 = vmatpush1.bf16.msra.mxu1 %v4098_v6  ;;  %v4559_v5 = vsub.s32 2, %v1812_v63  ;;  %v4561_v6 = vsub.s32 1, %v1812_v63 }
 0x145   :  { %2647 = vmatprep.subr.bf16.mxu0 %v4103_v7  ;;  %2729 = vmatprep.subr.bf16.mxu1 %v4106_v8  ;;  %v4563_v7 = vsub.s32 3, %v1812_v63  ;;  %v1835_v8 = vld [vmem:[%s4609_s3] sm:$0xf]  ;;  %v4208_v63 = vld [vmem:[#allocation7 + $0x30c] ss:$16 sps:$4 sm:$0xff]  }
 0x148   :  { %2648 = vmatpush1.bf16.msra.mxu0 %v4101_v9  ;;  %2730 = vmatpush1.bf16.msra.mxu1 %v4104_v10  ;;  %v1814_v9 = vrot.slane %v1809_v4, %v4554_v3  ;;  %v1822_v10 = vrot.slane %v1809_v4, %v4559_v5 }
 0x149   :  { %2649 = vmatprep.subr.bf16.mxu0 %v4109_v12  ;;  %2731 = vmatprep.subr.bf16.mxu1 %v4112_v13  ;;  %v1818_v12 = vrot.slane %v1809_v4, %v4561_v6 }
 0x14c   :  { %2650 = vmatpush1.bf16.msra.mxu0 %v4107_v14  ;;  %2732 = vmatpush1.bf16.msra.mxu1 %v4110_v15  ;;  %v1840_v14 = vrot.slane %v1835_v8, %v4554_v3  ;;  %v1826_v15 = vrot.slane %v1809_v4, %v4563_v7  ;;  %v4214_v4 = vld [vmem:[#allocation7 + $0x32c] ss:$16 sps:$4 sm:$0xff]  }
 0x14d   :  { %2651 = vmatprep.subr.bf16.mxu0 %v4115_v16  ;;  %2733 = vmatprep.subr.bf16.mxu1 %v4118_v17  ;;  %v1848_v16 = vrot.slane %v1835_v8, %v4559_v5 }
 0x150   :  { %2652 = vmatpush1.bf16.msra.mxu0 %v4113_v18  ;;  %2734 = vmatpush1.bf16.msra.mxu1 %v4116_v19  ;;  %v1844_v18 = vrot.slane %v1835_v8, %v4561_v6 }
 0x151   :  { %2653 = vmatprep.subr.bf16.mxu0 %v4121_v20  ;;  %2735 = vmatprep.subr.bf16.mxu1 %v4124_v21  ;;  %v1852_v21 = vrot.slane %v1835_v8, %v4563_v7  ;;  %v4209_v8 = vld [vmem:[#allocation7 + $0x320] ss:$16 sps:$4 sm:$0xff]  }
 0x154   :  { %2654 = vmatpush1.bf16.msra.mxu0 %v4119_v22  ;;  %2736 = vmatpush1.bf16.msra.mxu1 %v4122_v11 }
 0x155   :  { %2655 = vmatprep.subr.bf16.mxu0 %v4127_v23  ;;  %2737 = vmatprep.subr.bf16.mxu1 %v4130_v24 }
 0x158   :  { %2656 = vmatpush1.bf16.msra.mxu0 %v4125_v25  ;;  %2738 = vmatpush1.bf16.msra.mxu1 %v4128_v26 }
 0x159   :  { %2657 = vmatprep.subr.bf16.mxu0 %v4133_v27  ;;  %2739 = vmatprep.subr.bf16.mxu1 %v4136_v28 }
 0x15c   :  { %2658 = vmatpush1.bf16.msra.mxu0 %v4131_v29  ;;  %2740 = vmatpush1.bf16.msra.mxu1 %v4134_v30  ;;  %v4155_v30 = vld [vmem:[#allocation7 + $0x200] ss:$16 sps:$4 sm:$0xff]  }
 0x15d   :  { %2659 = vmatprep.subr.bf16.mxu0 %v4139_v31  ;;  %2741 = vmatprep.subr.bf16.mxu1 %v4142_v32  ;;  %v4158_v31 = vld [vmem:[#allocation7 + $0x208] ss:$16 sps:$4 sm:$0xff]  }
 0x160   :  { %2660 = vmatpush1.bf16.msra.mxu0 %v4137_v33  ;;  %2742 = vmatpush1.bf16.msra.mxu1 %v4140_v34  ;;  %v4163_v33 = vld [vmem:[#allocation7 + $0x224] ss:$16 sps:$4 sm:$0xff]   ;;  %v4166_v34 = vld [vmem:[#allocation7 + $0x22c] ss:$16 sps:$4 sm:$0xff]  }
 0x161   :  { %2661 = vmatprep.subr.bf16.mxu0 %v4145_v35  ;;  %2743 = vmatprep.subr.bf16.mxu1 %v4148_v36  ;;  %v4161_v36 = vld [vmem:[#allocation7 + $0x220] ss:$16 sps:$4 sm:$0xff]  }
 0x164   :  { %2662 = vmatpush1.bf16.msra.mxu0 %v4143_v37  ;;  %2744 = vmatpush1.bf16.msra.mxu1 %v4146_v38  ;;  %v4164_v37 = vld [vmem:[#allocation7 + $0x228] ss:$16 sps:$4 sm:$0xff]   ;;  %v4169_v38 = vld [vmem:[#allocation7 + $0x244] ss:$16 sps:$4 sm:$0xff]  }
 0x165   :  { %2663 = vmatprep.subr.bf16.mxu0 %v4151_v39  ;;  %2745 = vmatprep.subr.bf16.mxu1 %v4154_v40  ;;  %v4172_v39 = vld [vmem:[#allocation7 + $0x24c] ss:$16 sps:$4 sm:$0xff]   ;;  %v4167_v40 = vld [vmem:[#allocation7 + $0x240] ss:$16 sps:$4 sm:$0xff]  }
 0x168   :  { %2664 = vmatpush1.bf16.msra.mxu0 %v4149_v41  ;;  %2746 = vmatpush1.bf16.msra.mxu1 %v4152_v42  ;;  %v4170_v41 = vld [vmem:[#allocation7 + $0x248] ss:$16 sps:$4 sm:$0xff]   ;;  %v4175_v42 = vld [vmem:[#allocation7 + $0x264] ss:$16 sps:$4 sm:$0xff]  }
 0x169   :  { %2674 = vmatprep.subr.bf16.mxu0 %v4157_v43  ;;  %2756 = vmatprep.subr.bf16.mxu1 %v4160_v44  ;;  %v4178_v43 = vld [vmem:[#allocation7 + $0x26c] ss:$16 sps:$4 sm:$0xff]   ;;  %v4173_v44 = vld [vmem:[#allocation7 + $0x260] ss:$16 sps:$4 sm:$0xff]  }
 0x1fe   :  { %v1614_v45 = vpop.f32.mrb[0].mxu0  ;;  %v1778_v46 = vpop.f32.mrb[0].mxu1 }
 0x1ff   :  { %v3462_v47 = vmul.f32 -1.442695, %v1614_v45  ;;  %v3464_v48 = vmul.f32 -1.442695, %v1778_v46  ;;  %v1616_v49 = vpop.f32.mrb[1].mxu0  ;;  %v1780_v50 = vpop.f32.mrb[1].mxu1 }
 0x200   :  { %v3463_v51 = vmul.f32 -1.442695, %v1616_v49  ;;  %v3465_v52 = vmul.f32 -1.442695, %v1780_v50  ;;  %v1618_v53 = vpop.f32.mrb[2].mxu0  ;;  %v1782_v54 = vpop.f32.mrb[2].mxu1 }
 0x201   :  { %4283 = vpow2.f32 %v3462_v47  ;;  %v1619_v55 = vpop.f32.mrb[3].mxu0  ;;  %v1783_v56 = vpop.f32.mrb[3].mxu1  ;;  %v4176_v45 = vld [vmem:[#allocation7 + $0x268] ss:$16 sps:$4 sm:$0xff]   ;;  %v4181_v46 = vld [vmem:[#allocation7 + $0x284] ss:$16 sps:$4 sm:$0xff]  }
 0x202   :  { %4285 = vpow2.f32 %v3464_v48  ;;  %v4184_v47 = vld [vmem:[#allocation7 + $0x28c] ss:$16 sps:$4 sm:$0xff]   ;;  %v4179_v48 = vld [vmem:[#allocation7 + $0x280] ss:$16 sps:$4 sm:$0xff]   ;;  %v4182_v49 = vld [vmem:[#allocation7 + $0x288] ss:$16 sps:$4 sm:$0xff]  }
 0x203   :  { %4287 = vpow2.f32 %v3463_v51  ;;  %v4187_v50 = vld [vmem:[#allocation7 + $0x2a4] ss:$16 sps:$4 sm:$0xff]   ;;  %v4190_v51 = vld [vmem:[#allocation7 + $0x2ac] ss:$16 sps:$4 sm:$0xff]   ;;  %v4188_v53 = vld [vmem:[#allocation7 + $0x2a8] ss:$16 sps:$4 sm:$0xff]  }
 0x204   :  { %4289 = vpow2.f32 %v3465_v52  ;;  %v4185_v52 = vld [vmem:[#allocation7 + $0x2a0] ss:$16 sps:$4 sm:$0xff]   ;;  %v4193_v54 = vld [vmem:[#allocation7 + $0x2c4] ss:$16 sps:$4 sm:$0xff]   ;;  %v4196_v55 = vld [vmem:[#allocation7 + $0x2cc] ss:$16 sps:$4 sm:$0xff]  }
 0x205   :  { %v4191_v56 = vld [vmem:[#allocation7 + $0x2c0] ss:$16 sps:$4 sm:$0xff]  }
 0x20b   :  { %v4284_v58 = vpop.eup %4283 }
 0x20c   :  { %v4286_v59 = vpop.eup %4285  ;;  %v1797_v60 = vadd.f32 1.0, %v4284_v58  ;;  %v4199_v58 = vld [vmem:[#allocation7 + $0x2e4] ss:$16 sps:$4 sm:$0xff]  }
 0x20d   :  { %v4288_v61 = vpop.eup %4287  ;;  %v1799_v62 = vadd.f32 1.0, %v4286_v59  ;;  %v4202_v59 = vld [vmem:[#allocation7 + $0x2ec] ss:$16 sps:$4 sm:$0xff]  }
 0x20e   :  { %v4290_v0 = vpop.eup %4289  ;;  %4291 = vrcp.f32 %v1797_v60  ;;  %v1798_v1 = vadd.f32 1.0, %v4288_v61  ;;  %v4197_v60 = vld [vmem:[#allocation7 + $0x2e0] ss:$16 sps:$4 sm:$0xff]   ;;  %v4200_v61 = vld [vmem:[#allocation7 + $0x2e8] ss:$16 sps:$4 sm:$0xff]  }
 0x20f   :  { %4293 = vrcp.f32 %v1799_v62  ;;  %v1800_v2 = vadd.f32 1.0, %v4290_v0  ;;  %v4205_v62 = vld [vmem:[#allocation7 + $0x304] ss:$16 sps:$4 sm:$0xff]   ;;  %v4203_v0 = vld [vmem:[#allocation7 + $0x300] ss:$16 sps:$4 sm:$0xff]  }
 0x210   :  { %4295 = vrcp.f32 %v1798_v1  ;;  %v4206_v1 = vld [vmem:[#allocation7 + $0x308] ss:$16 sps:$4 sm:$0xff]  }
 0x211   :  { %4297 = vrcp.f32 %v1800_v2  ;;  %v4211_v2 = vld [vmem:[#allocation7 + $0x324] ss:$16 sps:$4 sm:$0xff]  }
 0x218   :  { %v4292_v13 = vpop.eup %4291 }
 0x219   :  { %v4294_v17 = vpop.eup %4293  ;;  %v1831_v19 = vmul.f32 %v4292_v13, %v1814_v9  ;;  %v4212_v9 = vld [vmem:[#allocation7 + $0x328] ss:$16 sps:$4 sm:$0xff]   ;;  %v4215_v13 = vld [vmem:[#allocation7 + $0x340] ss:$16 sps:$4 sm:$0xff]  }
 0x21a   :  { %v4296_v20 = vpop.eup %4295  ;;  %v1833_v22 = vmul.f32 %v4294_v17, %v1822_v10  ;;  %v4217_v10 = vld [vmem:[#allocation7 + $0x344] ss:$16 sps:$4 sm:$0xff]   ;;  %v4221_v17 = vld [vmem:[#allocation7 + $0x360] ss:$16 sps:$4 sm:$0xff]  }
 0x21b   :  { %v4298_v11 = vpop.eup %4297  ;;  %v1832_v23 = vmul.f32 %v4296_v20, %v1818_v12  ;;  %v1857_v24 = vadd.f32 %v1840_v14, %v1831_v19  ;;  %v4220_v12 = vld [vmem:[#allocation7 + $0x34c] ss:$16 sps:$4 sm:$0xff]   ;;  %v4218_v14 = vld [vmem:[#allocation7 + $0x348] ss:$16 sps:$4 sm:$0xff]   ;;  %v4229_v19 = vld [vmem:[#allocation7 + $0x384] ss:$16 sps:$4 sm:$0xff]  }
 0x21c   :  { %v1834_v25 = vmul.f32 %v4298_v11, %v1826_v15  ;;  %v4576_v26 = vadd.f32 %v1848_v16, %v1833_v22  ;;  %v4223_v15 = vld [vmem:[#allocation7 + $0x364] ss:$16 sps:$4 sm:$0xff]   ;;  %v4226_v16 = vld [vmem:[#allocation7 + $0x36c] ss:$16 sps:$4 sm:$0xff]   ;;  %v4230_v22 = vld [vmem:[#allocation7 + $0x388] ss:$16 sps:$4 sm:$0xff]  }
 0x21d   :  { %v1858_v27 = vadd.f32 %v1844_v18, %v1832_v23  ;;  %v1861_v32 = vpack.c.bf16 %v1857_v24, %v1857_v24  ;;  %v4224_v18 = vld [vmem:[#allocation7 + $0x368] ss:$16 sps:$4 sm:$0xff]   ;;  %v4232_v20 = vld [vmem:[#allocation7 + $0x38c] ss:$16 sps:$4 sm:$0xff]   ;;  %v4235_v11 = vld [vmem:[#allocation7 + $0x3a4] ss:$16 sps:$4 sm:$0xff]  }
 0x21e   :  { %v1860_v28 = vadd.f32 %v1852_v21, %v1834_v25  ;;  %v4227_v21 = vld [vmem:[#allocation7 + $0x380] ss:$16 sps:$4 sm:$0xff]   ;;  %v4238_v23 = vld [vmem:[#allocation7 + $0x3ac] ss:$16 sps:$4 sm:$0xff]   ;;  %v4236_v25 = vld [vmem:[#allocation7 + $0x3a8] ss:$16 sps:$4 sm:$0xff]  }
 0x21f   :  { %v1862_v29 = vpack.c.bf16 %v1858_v27, %v1858_v27  ;;  %v4233_v24 = vld [vmem:[#allocation7 + $0x3a0] ss:$16 sps:$4 sm:$0xff]   ;;  %v4241_v27 = vld [vmem:[#allocation7 + $0x3c4] ss:$16 sps:$4 sm:$0xff]  }
 0x220   :  { %v1864_v35 = vpack.c.bf16 %v1860_v28, %v1860_v28  ;;  %v4244_v28 = vld [vmem:[#allocation7 + $0x3cc] ss:$16 sps:$4 sm:$0xff]  }
 0x221   :  { %2665 = vmatprep.mubr.bf16.mxu0 %v1862_v29  ;;  %2747 = vmatprep.mubr.bf16.mxu1 %v1862_v29  ;;  %v4239_v29 = vld [vmem:[#allocation7 + $0x3c0] ss:$16 sps:$4 sm:$0xff]  }
 0x222   :  { %2666 = vmatmul.mubr.bf16.vlgmr.msra.gmra.mrb[4].mxu0 %v1861_v32  ;;  %2748 = vmatmul.mubr.bf16.vlgmr.msra.gmra.mrb[4].mxu1 %v1861_v32  ;;  %v4250_v32 = vld [vmem:[#allocation7 + $0x3ec] ss:$16 sps:$4 sm:$0xff]  }
 0x223   :  { %2675 = vmatpush1.bf16.msra.mxu0 %v4155_v30  ;;  %2757 = vmatpush1.bf16.msra.mxu1 %v4158_v31  ;;  %v4242_v30 = vld [vmem:[#allocation7 + $0x3c8] ss:$16 sps:$4 sm:$0xff]   ;;  %v4247_v31 = vld [vmem:[#allocation7 + $0x3e4] ss:$16 sps:$4 sm:$0xff]  }
 0x224   :  { %2706 = vmatprep.mubr.bf16.mxu0 %v1864_v35  ;;  %2788 = vmatprep.mubr.bf16.mxu1 %v1864_v35  ;;  %v1863_v35 = vpack.c.bf16 %v4576_v26, %v4576_v26  ;;  %v4260_v26 = vld [vmem:[#allocation8 + $0xd0] sm:$0xff]  }
 0x225   :  { %2676 = vmatprep.subr.bf16.mxu0 %v4163_v33  ;;  %2758 = vmatprep.subr.bf16.mxu1 %v4166_v34  ;;  %v4245_v33 = vld [vmem:[#allocation7 + $0x3e0] ss:$16 sps:$4 sm:$0xff]   ;;  %v4248_v34 = vld [vmem:[#allocation7 + $0x3e8] ss:$16 sps:$4 sm:$0xff]  }
 0x227   :  { %2677 = vmatpush1.bf16.msra.mxu0 %v4161_v36  ;;  %2759 = vmatpush1.bf16.msra.mxu1 %v4164_v37  ;;  %v4251_v36 = vld [vmem:[#allocation8 + $0x40] sm:$0xff]  }
 0x228   :  { %2678 = vmatprep.subr.bf16.mxu0 %v4169_v38  ;;  %2760 = vmatprep.subr.bf16.mxu1 %v4172_v39  ;;  %v4252_v37 = vld [vmem:[#allocation8 + $0xc0] sm:$0xff]  }
 0x229   :  { %v4253_v38 = vld [vmem:[#allocation8] sm:$0xff]  }
 0x22a   :  { %v4254_v39 = vld [vmem:[#allocation8 + $0x80] sm:$0xff]  }
 0x22b   :  { %2679 = vmatpush1.bf16.msra.mxu0 %v4167_v40  ;;  %2761 = vmatpush1.bf16.msra.mxu1 %v4170_v41  ;;  %v4255_v40 = vld [vmem:[#allocation8 + $0x48] sm:$0xff]  }
 0x22c   :  { %2680 = vmatprep.subr.bf16.mxu0 %v4175_v42  ;;  %2762 = vmatprep.subr.bf16.mxu1 %v4178_v43  ;;  %v4256_v41 = vld [vmem:[#allocation8 + $0xc8] sm:$0xff]  }
 0x22d   :  { %v4257_v42 = vld [vmem:[#allocation8 + $0x8] sm:$0xff]  }
 0x22e   :  { %v4258_v43 = vld [vmem:[#allocation8 + $0x88] sm:$0xff]  }
 0x22f   :  { %2681 = vmatpush1.bf16.msra.mxu0 %v4173_v44  ;;  %2763 = vmatpush1.bf16.msra.mxu1 %v4176_v45  ;;  %v4259_v44 = vld [vmem:[#allocation8 + $0x50] sm:$0xff]  }
 0x230   :  { %2682 = vmatprep.subr.bf16.mxu0 %v4181_v46  ;;  %2764 = vmatprep.subr.bf16.mxu1 %v4184_v47  ;;  %v4261_v45 = vld [vmem:[#allocation8 + $0x10] sm:$0xff]   ;;  %v4263_v47 = vld [vmem:[#allocation8 + $0x58] sm:$0xff]  }
 0x231   :  { %v4262_v46 = vld [vmem:[#allocation8 + $0x90] sm:$0xff]  }
 0x233   :  { %2683 = vmatpush1.bf16.msra.mxu0 %v4179_v48  ;;  %2765 = vmatpush1.bf16.msra.mxu1 %v4182_v49  ;;  %v4264_v48 = vld [vmem:[#allocation8 + $0xd8] sm:$0xff]  }
 0x234   :  { %2684 = vmatprep.subr.bf16.mxu0 %v4187_v50  ;;  %2766 = vmatprep.subr.bf16.mxu1 %v4190_v51  ;;  %v4265_v49 = vld [vmem:[#allocation8 + $0x18] sm:$0xff]   ;;  %v4267_v51 = vld [vmem:[#allocation8 + $0x60] sm:$0xff]  }
 0x235   :  { %v4266_v50 = vld [vmem:[#allocation8 + $0x98] sm:$0xff]  }
 0x237   :  { %2685 = vmatpush1.bf16.msra.mxu0 %v4185_v52  ;;  %2767 = vmatpush1.bf16.msra.mxu1 %v4188_v53  ;;  %v4268_v52 = vld [vmem:[#allocation8 + $0xe0] sm:$0xff]  }
 0x238   :  { %2686 = vmatprep.subr.bf16.mxu0 %v4193_v54  ;;  %2768 = vmatprep.subr.bf16.mxu1 %v4196_v55  ;;  %v4269_v53 = vld [vmem:[#allocation8 + $0x20] sm:$0xff]   ;;  %v4271_v55 = vld [vmem:[#allocation8 + $0x68] sm:$0xff]  }
 0x239   :  { %v4270_v54 = vld [vmem:[#allocation8 + $0xa0] sm:$0xff]  }
 0x23b   :  { %2687 = vmatpush1.bf16.msra.mxu0 %v4191_v56  ;;  %2769 = vmatpush1.bf16.msra.mxu1 %v4194_v57  ;;  %v4272_v56 = vld [vmem:[#allocation8 + $0xe8] sm:$0xff]  }
 0x23c   :  { %2688 = vmatprep.subr.bf16.mxu0 %v4199_v58  ;;  %2770 = vmatprep.subr.bf16.mxu1 %v4202_v59  ;;  %v4273_v57 = vld [vmem:[#allocation8 + $0x28] sm:$0xff]   ;;  %v4275_v59 = vld [vmem:[#allocation8 + $0x70] sm:$0xff]  }
 0x23d   :  { %v4274_v58 = vld [vmem:[#allocation8 + $0xa8] sm:$0xff]  }
 0x23f   :  { %2689 = vmatpush1.bf16.msra.mxu0 %v4197_v60  ;;  %2771 = vmatpush1.bf16.msra.mxu1 %v4200_v61  ;;  %v4276_v60 = vld [vmem:[#allocation8 + $0xf0] sm:$0xff]  }
 0x240   :  { %2690 = vmatprep.subr.bf16.mxu0 %v4205_v62  ;;  %2772 = vmatprep.subr.bf16.mxu1 %v4208_v63  ;;  %v4277_v61 = vld [vmem:[#allocation8 + $0x30] sm:$0xff]   ;;  %v4279_v63 = vld [vmem:[#allocation8 + $0x78] sm:$0xff]  }
 0x241   :  { %v4278_v62 = vld [vmem:[#allocation8 + $0xb0] sm:$0xff]  }
 0x243   :  { %2691 = vmatpush1.bf16.msra.mxu0 %v4203_v0  ;;  %2773 = vmatpush1.bf16.msra.mxu1 %v4206_v1  ;;  %v4280_v0 = vld [vmem:[#allocation8 + $0xf8] sm:$0xff]  }
 0x244   :  { %2692 = vmatprep.subr.bf16.mxu0 %v4211_v2  ;;  %2774 = vmatprep.subr.bf16.mxu1 %v4214_v4  ;;  %v4281_v1 = vld [vmem:[#allocation8 + $0x38] sm:$0xff]  }
 0x245   :  { %v4282_v2 = vld [vmem:[#allocation8 + $0xb8] sm:$0xff]  }
 0x247   :  { %2693 = vmatpush1.bf16.msra.mxu0 %v4209_v8  ;;  %2775 = vmatpush1.bf16.msra.mxu1 %v4212_v9 }
 0x248   :  { %2694 = vmatprep.subr.bf16.mxu0 %v4217_v10  ;;  %2776 = vmatprep.subr.bf16.mxu1 %v4220_v12 }
 0x24b   :  { %2695 = vmatpush1.bf16.msra.mxu0 %v4215_v13  ;;  %2777 = vmatpush1.bf16.msra.mxu1 %v4218_v14 }
 0x24c   :  { %2696 = vmatprep.subr.bf16.mxu0 %v4223_v15  ;;  %2778 = vmatprep.subr.bf16.mxu1 %v4226_v16 }
 0x24f   :  { %2697 = vmatpush1.bf16.msra.mxu0 %v4221_v17  ;;  %2779 = vmatpush1.bf16.msra.mxu1 %v4224_v18 }
 0x250   :  { %2698 = vmatprep.subr.bf16.mxu0 %v4229_v19  ;;  %2780 = vmatprep.subr.bf16.mxu1 %v4232_v20 }
 0x253   :  { %2699 = vmatpush1.bf16.msra.mxu0 %v4227_v21  ;;  %2781 = vmatpush1.bf16.msra.mxu1 %v4230_v22 }
 0x254   :  { %2700 = vmatprep.subr.bf16.mxu0 %v4235_v11  ;;  %2782 = vmatprep.subr.bf16.mxu1 %v4238_v23 }
 0x257   :  { %2701 = vmatpush1.bf16.msra.mxu0 %v4233_v24  ;;  %2783 = vmatpush1.bf16.msra.mxu1 %v4236_v25 }
 0x258   :  { %2702 = vmatprep.subr.bf16.mxu0 %v4241_v27  ;;  %2784 = vmatprep.subr.bf16.mxu1 %v4244_v28  ;;  %v2821_v28 = vld [vmem:[%s4611_s5] sm:$0xf]  ;;  %s4442_s5 = smov [#allocation10]  }
 0x25b   :  { %2703 = vmatpush1.bf16.msra.mxu0 %v4239_v29  ;;  %2785 = vmatpush1.bf16.msra.mxu1 %v4242_v30  ;;  %v2847_v29 = vld [vmem:[%s4612_s6] sm:$0xf]  ;;  %v2826_v30 = vrot.slane %v2821_v28, %v4554_v3  ;;  %s3220_s6 = sshll.u32 %s4442_s5, 4  ;;  %s3221_s6 = int_to_ptr.vmem [resolvable:$true] %s3220_s6 }
 0x25c   :  { %2704 = vmatprep.subr.bf16.mxu0 %v4247_v31  ;;  %2786 = vmatprep.subr.bf16.mxu1 %v4250_v32  ;;  %v2834_v31 = vrot.slane %v2821_v28, %v4559_v5  ;;  %v2830_v32 = vrot.slane %v2821_v28, %v4561_v6  ;;  %s4403_s14 = scalar_lea.vmem %s3221_s6, 128  ;;  %p4408_p5 = scmp.lt.s32.totalorder %s3221_s6, %s3221_s6 }
 0x25d   :  { %p4404_p4 = scmp.ne.s32.totalorder %s3221_s6, %s4403_s14  ;;  %p4409_p6 = scmp.lt.s32.totalorder %s4403_s14, %s4403_s14 }
 0x25f   :  { %2705 = vmatpush1.bf16.msra.mxu0 %v4245_v33  ;;  %2787 = vmatpush1.bf16.msra.mxu1 %v4248_v34  ;;  %v2838_v34 = vrot.slane %v2821_v28, %v4563_v7  ;;  %p4410_p7 = por %p4409_p6, %p4408_p5 }
 0x260   :  { %3630 = vmatprep.subr.bf16.mxu0 %v4251_v36  ;;  %3652 = vmatprep.subr.bf16.mxu1 %v4252_v37  ;;  %v2856_v37 = vrot.slane %v2847_v29, %v4561_v6 }
 0x261   :  { %p4411_p8 = pnand %p4410_p7, %p4404_p4 }
 0x262   :  { %2707 = vmatmul.mubr.bf16.vlgmr.msra.gmra.mrb[4].mxu0 %v1863_v35  ;;  %2789 = vmatmul.mubr.bf16.vlgmr.msra.gmra.mrb[4].mxu1 %v1863_v35  ;;  %v2852_v35 = vrot.slane %v2847_v29, %v4554_v3 }
 0x263   :  { %3631 = vmatpush3.bf16.msra.mxu0 %v4253_v38  ;;  %3653 = vmatpush3.bf16.msra.mxu1 %v4254_v39  ;;  %v2860_v39 = vrot.slane %v2847_v29, %v4559_v5 }
 0x264   :  { %3632 = vmatprep.subr.bf16.mxu0 %v4255_v40  ;;  %3654 = vmatprep.subr.bf16.mxu1 %v4256_v41  ;;  %v2864_v41 = vrot.slane %v2847_v29, %v4563_v7 }
 0x267   :  { %3633 = vmatpush3.bf16.msra.mxu0 %v4257_v42  ;;  %3655 = vmatpush3.bf16.msra.mxu1 %v4258_v43 }
 0x268   :  { %3634 = vmatprep.subr.bf16.mxu0 %v4259_v44  ;;  %3656 = vmatprep.subr.bf16.mxu1 %v4260_v26 }
 0x26b   :  { %3635 = vmatpush3.bf16.msra.mxu0 %v4261_v45  ;;  %3657 = vmatpush3.bf16.msra.mxu1 %v4262_v46 }
 0x26c   :  { %3636 = vmatprep.subr.bf16.mxu0 %v4263_v47  ;;  %3658 = vmatprep.subr.bf16.mxu1 %v4264_v48 }
 0x26f   :  { %3637 = vmatpush3.bf16.msra.mxu0 %v4265_v49  ;;  %3659 = vmatpush3.bf16.msra.mxu1 %v4266_v50 }
 0x270   :  { %3638 = vmatprep.subr.bf16.mxu0 %v4267_v51  ;;  %3660 = vmatprep.subr.bf16.mxu1 %v4268_v52 }
 0x273   :  { %3639 = vmatpush3.bf16.msra.mxu0 %v4269_v53  ;;  %3661 = vmatpush3.bf16.msra.mxu1 %v4270_v54 }
 0x274   :  { %3640 = vmatprep.subr.bf16.mxu0 %v4271_v55  ;;  %3662 = vmatprep.subr.bf16.mxu1 %v4272_v56 }
 0x277   :  { %3641 = vmatpush3.bf16.msra.mxu0 %v4273_v57  ;;  %3663 = vmatpush3.bf16.msra.mxu1 %v4274_v58 }
 0x278   :  { %3642 = vmatprep.subr.bf16.mxu0 %v4275_v59  ;;  %3664 = vmatprep.subr.bf16.mxu1 %v4276_v60 }
 0x27b   :  { %3643 = vmatpush3.bf16.msra.mxu0 %v4277_v61  ;;  %3665 = vmatpush3.bf16.msra.mxu1 %v4278_v62 }
 0x27c   :  { %3644 = vmatprep.subr.bf16.mxu0 %v4279_v63  ;;  %3666 = vmatprep.subr.bf16.mxu1 %v4280_v0 }
 0x27f   :  { %3645 = vmatpush3.bf16.msra.mxu0 %v4281_v1  ;;  %3667 = vmatpush3.bf16.msra.mxu1 %v4282_v2 }
 0x335   :  { %v2708_v4 = vpop.f32.mrb[4].mxu0  ;;  %v2790_v8 = vpop.f32.mrb[4].mxu1 }
 0x336   :  { %v3594_v9 = vmul.f32 -1.442695, %v2708_v4  ;;  %v3596_v10 = vmul.f32 -1.442695, %v2790_v8  ;;  %v2710_v12 = vpop.f32.mrb[5].mxu0  ;;  %v2792_v13 = vpop.f32.mrb[5].mxu1 }
 0x337   :  { %v3595_v14 = vmul.f32 -1.442695, %v2710_v12  ;;  %v3597_v15 = vmul.f32 -1.442695, %v2792_v13  ;;  %v2712_v16 = vpop.f32.mrb[6].mxu0  ;;  %v2794_v17 = vpop.f32.mrb[6].mxu1 }
 0x338   :  { %4299 = vpow2.f32 %v3594_v9  ;;  %v2713_v18 = vpop.f32.mrb[7].mxu0  ;;  %v2795_v19 = vpop.f32.mrb[7].mxu1 }
 0x339   :  { %4301 = vpow2.f32 %v3596_v10 }
 0x33a   :  { %4303 = vpow2.f32 %v3595_v14 }
 0x33b   :  { %4305 = vpow2.f32 %v3597_v15 }
 0x342   :  { %v4300_v20 = vpop.eup %4299 }
 0x343   :  { %v4302_v21 = vpop.eup %4301  ;;  %v2809_v22 = vadd.f32 1.0, %v4300_v20 }
 0x344   :  { %v4304_v11 = vpop.eup %4303  ;;  %v2811_v23 = vadd.f32 1.0, %v4302_v21 }
 0x345   :  { %v4306_v24 = vpop.eup %4305  ;;  %4307 = vrcp.f32 %v2809_v22  ;;  %v2810_v25 = vadd.f32 1.0, %v4304_v11 }
 0x346   :  { %4309 = vrcp.f32 %v2811_v23  ;;  %v2812_v27 = vadd.f32 1.0, %v4306_v24 }
 0x347   :  { %4311 = vrcp.f32 %v2810_v25 }
 0x348   :  { %4313 = vrcp.f32 %v2812_v27 }
 0x34f   :  { %v4308_v33 = vpop.eup %4307 }
 0x350   :  { %v4310_v36 = vpop.eup %4309  ;;  %v2843_v38 = vmul.f32 %v4308_v33, %v2826_v30 }
 0x351   :  { %v4312_v40 = vpop.eup %4311  ;;  %v2845_v42 = vmul.f32 %v4310_v36, %v2834_v31 }
 0x352   :  { %v4314_v43 = vpop.eup %4313  ;;  %v2844_v44 = vmul.f32 %v4312_v40, %v2830_v32  ;;  %v2869_v45 = vadd.f32 %v2852_v35, %v2843_v38 }
 0x353   :  { %v2846_v26 = vmul.f32 %v4314_v43, %v2838_v34  ;;  %v2871_v47 = vadd.f32 %v2860_v39, %v2845_v42 }
 0x354   :  { %v2870_v46 = vadd.f32 %v2856_v37, %v2844_v44  ;;  %v2873_v3 = vpack.c.bf16 %v2869_v45, %v2869_v45 }
 0x355   :  { %v2872_v48 = vadd.f32 %v2864_v41, %v2846_v26  ;;  %v2875_v51 = vpack.c.bf16 %v2871_v47, %v2871_v47 }
 0x356   :  { %v2874_v49 = vpack.c.bf16 %v2870_v46, %v2870_v46 }
 0x357   :  { %v2876_v50 = vpack.c.bf16 %v2872_v48, %v2872_v48 }
 0x358   :  { %3165 = vmatprep.mubr.bf16.mxu0 %v2874_v49 }
 0x359   :  { %3205 = vmatprep.mubr.bf16.mxu1 %v2876_v50  ;;  %3166 = vmatmul.mubr.bf16.vlgmr.msra.gmra.mrb[8].mxu0 %v2873_v3 }
 0x35a   :  { %3206 = vmatmul.mubr.bf16.vlgmr.msra.gmra.mrb[8].mxu1 %v2875_v51 }
 0x42c   :  { %v3646_v5 = vpop.f32.mrb[8].mxu0 }
 0x42d   :  { %v3668_v6 = vpop.f32.mrb[8].mxu1  ;;  %v3647_v52 = vpop.f32.mrb[9].mxu0 }
 0x42e   :  { %v3648_v7 = vadd.f32 %v3647_v52, %v3646_v5  ;;  %v3669_v53 = vpop.f32.mrb[9].mxu1  ;;  %v3649_v54 = vpop.f32.mrb[10].mxu0 }
 0x42f   :  { %v3670_v55 = vadd.f32 %v3669_v53, %v3668_v6  ;;  %v3671_v56 = vpop.f32.mrb[10].mxu1  ;;  %v3650_v57 = vpop.f32.mrb[11].mxu0 }
 0x430   :  { %v3672_v58 = vpop.f32.mrb[11].mxu1 }
 0x431   :  { %v3208_v59 = vadd.f32 %v3670_v55, %v3648_v7 }
 0x433   :  { %3213 = vst [vmem:[#allocation10] sm:$0xff] %v3208_v59 }
 0x434   :  { %4414 = shalt.err (!%p4411_p8)
}
 0x435   :  { %s4415_s19 = scalar_lea.hbm %s4614_s8, 128 }
 0x436   :  { %p4416_p9 = scmp.ne.s32.totalorder %s4614_s8, %s4415_s19  ;;  %p4419_p10 = scmp.lt.u32.totalorder %s4415_s19, %s4614_s8 }
 0x438   :  { %p4421_p11 = pnand %p4419_p10, %p4416_p9 }
 0x43a   :  { %4424 = shalt.err (!%p4421_p11)
}
 0x43b   :  { %3223 = dma.vmem_to_hbm [thread:$0]  %s3221_s6, 128, %s4614_s8, [#allocation4]  }
 0x43c   :  { %4431 = dma.done.wait [#allocation4], 128  }
 0x43d   :  { %4432 = vsyncadd [#allocation4], 4294967168 }
 0x43e   :  { %3227 = vsyncpa [#allocation3], 1 }
 0x43f   :  { %3228 = vsyncpa [#allocation6], 1 }
 0x440   :  { %3229 = vsyncpa [#allocation9], 1 }
 0x441   :  { %3230 = vsyncpa [#allocation4], 1 }

</bundles_post_ra>
